<compile_context>
chip_gen: v7x
topology: tpu7x:2x2x1
jax: 0.10.0
libtpu: 0.0.40
codegen_flags: <defaults>
</compile_context>

<pallas_src>
import jax
import jax.numpy as jnp
from jax import lax
from jax.experimental import pallas as pl
from jax.experimental.pallas import tpu as pltpu

# ---------------- tiny synthetic Llama config ----------------
VOCAB = 64
HIDDEN = 32
N_HEADS = 4
HEAD_DIM = HIDDEN // N_HEADS
HALF = HEAD_DIM // 2
INTER = 64
N_LAYERS = 2
RMS_EPS = 1e-5
ROPE_THETA = 10000.0
NEG_INF = -1e9

BLK = 128                      # lane block size every weight segment is padded to
QKV_COLS = 5 * BLK             # [q | k | v | q@R | k@R] blocks
GU_COLS = 2 * BLK              # [gate | up] blocks
LOGIT_W = 128                  # lm_head padded to a lane-dense 128-wide output


# ---------------- single fused forward kernel ----------------
def _llama_fwd_kernel(ids_ref, bias_ref, cos_ref, sin_ref, hmask_ref,
                      embed_ref, aln_ref, mln_ref, fln_ref,
                      wqkv_ref, wo_ref, wgu_ref, wd_ref, lmh_ref,
                      out_ref):
    S = ids_ref.shape[1]

    # ---- embedding: exact bf16 one-hot row gather on the MXU ----
    ids = ids_ref[0]                                                   # (S, 1) int32
    vocab_iota = lax.broadcasted_iota(jnp.int32, (S, VOCAB), 1)
    onehot = (ids == vocab_iota).astype(jnp.bfloat16)                  # (S, VOCAB)
    x = jnp.dot(onehot, embed_ref[...],
                preferred_element_type=jnp.float32).astype(jnp.bfloat16)

    bias = bias_ref[0]                                                 # (S, P) f32, causal+padding
    hmask = hmask_ref[...]                                             # (P, H) bf16, head block-diag
    cos = cos_ref[...]                                                 # (S, 2*BLK) f32 (scale folded in)
    sin = sin_ref[...]

    def rmsnorm(v, w):
        # f32 statistics, bf16 output * bf16 weight (matches HF LlamaRMSNorm order).
        vf = v.astype(jnp.float32)
        var = jnp.mean(vf * vf, axis=-1, keepdims=True)
        vn = vf * lax.rsqrt(var + RMS_EPS)
        return vn.astype(jnp.bfloat16) * w

    for l in range(N_LAYERS):
        # ---------------- self-attention block ----------------
        h = rmsnorm(x, aln_ref[l])                                     # (S, H) bf16
        qq = jnp.dot(h, wqkv_ref[l],
                     preferred_element_type=jnp.float32)               # (S, 5*BLK) f32
        # RoPE as one aligned FMA: blocks [q|k]*cos + [q@R|k@R]*sin; v passes through.
        ropeqk = qq[:, :2 * BLK] * cos + qq[:, 3 * BLK:] * sin         # (S, 2*BLK)
        q = ropeqk[:, :HIDDEN].astype(jnp.bfloat16)                    # (S, H)
        k = ropeqk[:, BLK:BLK + HIDDEN].astype(jnp.bfloat16)
        v = qq[:, 2 * BLK:2 * BLK + HIDDEN].astype(jnp.bfloat16)

        # packed block-diagonal attention: all heads in one score matmul.
        kbd = jnp.tile(k, (N_HEADS, 1)) * hmask                        # (P, H) bf16
        s = jnp.einsum("sc,jc->sj", q, kbd,
                       preferred_element_type=jnp.float32) + bias      # (S, P) f32
        s = s - jnp.max(s, axis=-1, keepdims=True)
        p = jnp.exp(s).astype(jnp.bfloat16)                            # (S, P)
        vbd = jnp.tile(v, (N_HEADS, 1)) * hmask                        # (P, H) bf16
        num = jnp.dot(p, vbd, preferred_element_type=jnp.float32)      # (S, H)
        den = jnp.dot(p, hmask, preferred_element_type=jnp.float32)    # per-head softmax denom
        inv = pl.reciprocal(jnp.maximum(den, 1e-20), approx=True)
        attn = (num * inv).astype(jnp.bfloat16)                        # (S, H)
        x = x + jnp.dot(attn, wo_ref[l],
                        preferred_element_type=jnp.float32).astype(jnp.bfloat16)

        # ---------------- SwiGLU MLP block (gate/up padded to 128-lane blocks) ----------------
        h = rmsnorm(x, mln_ref[l])
        gu = jnp.dot(h, wgu_ref[l],
                     preferred_element_type=jnp.float32)               # (S, 2*BLK)
        g = gu[:, :BLK]
        u = gu[:, BLK:]
        act = (g * jax.nn.sigmoid(g) * u).astype(jnp.bfloat16)         # (S, BLK), pad lanes are 0
        x = x + jnp.dot(act, wd_ref[l],
                        preferred_element_type=jnp.float32).astype(jnp.bfloat16)

    # ---------------- final norm + lm_head (lane-dense f32 logits store) ----------------
    xf = rmsnorm(x, fln_ref[...])
    out_ref[0] = jnp.dot(xf, lmh_ref[...], preferred_element_type=jnp.float32)


# ---------------- parameter init (deterministic, synthetic) ----------------
def init_params(key):
    def dense(k, shape, scale=0.02):
        return (scale * jax.random.normal(k, shape, dtype=jnp.float32)).astype(jnp.bfloat16)

    keys = jax.random.split(key, 2 + N_LAYERS)
    wq, wk, wv, wo, wg, wu, wd = [], [], [], [], [], [], []
    for l in range(N_LAYERS):
        lk = jax.random.split(keys[2 + l], 7)
        wq.append(dense(lk[0], (HIDDEN, HIDDEN)))
        wk.append(dense(lk[1], (HIDDEN, HIDDEN)))
        wv.append(dense(lk[2], (HIDDEN, HIDDEN)))
        wo.append(dense(lk[3], (HIDDEN, HIDDEN)))
        wg.append(dense(lk[4], (HIDDEN, INTER)))
        wu.append(dense(lk[5], (HIDDEN, INTER)))
        wd.append(dense(lk[6], (INTER, HIDDEN)))
    return {
        "embed": dense(keys[0], (VOCAB, HIDDEN)),
        "lm_head": dense(keys[1], (HIDDEN, VOCAB)),
        "attn_norm": jnp.ones((N_LAYERS, 1, HIDDEN), jnp.bfloat16),
        "mlp_norm": jnp.ones((N_LAYERS, 1, HIDDEN), jnp.bfloat16),
        "final_norm": jnp.ones((1, HIDDEN), jnp.bfloat16),
        "wq": jnp.stack(wq), "wk": jnp.stack(wk), "wv": jnp.stack(wv),
        "wo": jnp.stack(wo), "wg": jnp.stack(wg), "wu": jnp.stack(wu),
        "wd": jnp.stack(wd),
    }


# ---------------- wrapper-side layout plumbing ----------------
def _rot_half_matrix():
    """(H, H) signed permutation so that (x @ R) == rotate_half(x) on the head-folded layout."""
    idx = jnp.arange(HIDDEN)
    d = idx % HEAD_DIM
    src = jnp.where(d < HALF, idx + HALF, idx - HALF)
    sign = jnp.where(d < HALF, -1.0, 1.0).astype(jnp.float32)
    return (idx[:, None] == src[None, :]).astype(jnp.float32) * sign[None, :]


def _rope_tables(seq_len):
    inv_freq = 1.0 / (ROPE_THETA ** (
        jnp.arange(0, HEAD_DIM, 2, dtype=jnp.float32) / HEAD_DIM))
    t = jnp.arange(seq_len, dtype=jnp.float32)
    freqs = jnp.outer(t, inv_freq)
    emb = jnp.concatenate([freqs, freqs], axis=-1)          # (S, head_dim)
    cos_h, sin_h = jnp.cos(emb), jnp.sin(emb)
    cos32 = jnp.tile(cos_h, (1, N_HEADS))                   # (S, H) head-folded
    sin32 = jnp.tile(sin_h, (1, N_HEADS))
    scale = HEAD_DIM ** -0.5                                # folded into the q-side tables
    pad = jnp.zeros((seq_len, BLK - HIDDEN), jnp.float32)
    cos_t = jnp.concatenate([cos32 * scale, pad, cos32, pad], axis=1)   # (S, 2*BLK)
    sin_t = jnp.concatenate([sin32 * scale, pad, sin32, pad], axis=1)
    return cos_t, sin_t


def _pack_params(p):
    """Fuse / pad weights into 128-lane blocks (pure layout plumbing)."""
    f32 = jnp.float32
    rot = _rot_half_matrix()
    wqr = jnp.einsum("lij,jk->lik", p["wq"].astype(f32), rot).astype(jnp.bfloat16)
    wkr = jnp.einsum("lij,jk->lik", p["wk"].astype(f32), rot).astype(jnp.bfloat16)

    def pad_cols(w):
        padw = jnp.zeros((N_LAYERS, HIDDEN, BLK - w.shape[-1]), jnp.bfloat16)
        return jnp.concatenate([w, padw], axis=2)

    wqkv = jnp.concatenate([pad_cols(p["wq"]), pad_cols(p["wk"]), pad_cols(p["wv"]),
                            pad_cols(wqr), pad_cols(wkr)], axis=2)       # (L, H, 5*BLK)
    wgu = jnp.concatenate([pad_cols(p["wg"]), pad_cols(p["wu"])], axis=2)  # (L, H, 2*BLK)
    wd = jnp.concatenate(
        [p["wd"], jnp.zeros((N_LAYERS, BLK - INTER, HIDDEN), jnp.bfloat16)], axis=1)  # (L, BLK, H)
    lmh = jnp.concatenate(
        [p["lm_head"], jnp.zeros((HIDDEN, LOGIT_W - VOCAB), jnp.bfloat16)], axis=1)   # (H, 128)
    return wqkv, wgu, wd, lmh


def _head_mask(seq_len):
    """(P, H) bf16: 1 where packed-key head (row // S) == channel head (col // head_dim)."""
    P = N_HEADS * seq_len
    key_head = jnp.arange(P)[:, None] // seq_len
    chan_head = jnp.arange(HIDDEN)[None, :] // HEAD_DIM
    return (key_head == chan_head).astype(jnp.bfloat16)


def _attn_bias(attention_mask):
    """(B, S, P) f32 additive bias: causal + key padding, keys packed (head, kpos) on lanes."""
    B, S = attention_mask.shape
    P = N_HEADS * S
    qpos = jnp.arange(S, dtype=jnp.int32)[:, None]
    kpos = jnp.arange(P, dtype=jnp.int32)[None, :] % S
    causal = qpos >= kpos                                                 # (S, P)
    amk = jnp.tile(attention_mask.astype(jnp.int32), (1, N_HEADS)) > 0    # (B, P)
    keep = causal[None, :, :] & amk[:, None, :]
    return jnp.where(keep, 0.0, NEG_INF).astype(jnp.float32)


# ---------------- full forward (returns float32 logits, like outputs.logits) ----------------
def llama_forward(params, input_ids, attention_mask):
    B, S = input_ids.shape
    P = N_HEADS * S
    cos_t, sin_t = _rope_tables(S)
    wqkv, wgu, wd, lmh = _pack_params(params)
    bias = _attn_bias(attention_mask)
    hmask = _head_mask(S)
    ids3 = input_ids.astype(jnp.int32).reshape(B, S, 1)

    def full(shape):
        return pl.BlockSpec(shape, lambda b, _n=len(shape): (0,) * _n)

    padded = pl.pallas_call(
        _llama_fwd_kernel,
        out_shape=jax.ShapeDtypeStruct((B, S, LOGIT_W), jnp.float32),
        grid=(B,),
        in_specs=[
            pl.BlockSpec((1, S, 1), lambda b: (b, 0, 0)),    # input_ids (per batch)
            pl.BlockSpec((1, S, P), lambda b: (b, 0, 0)),    # causal+padding bias (per batch)
            full((S, 2 * BLK)),                              # cos (scale folded into q lanes)
            full((S, 2 * BLK)),                              # sin
            full((P, HIDDEN)),                               # head block-diagonal mask
            full((VOCAB, HIDDEN)),                           # embedding table
            full((N_LAYERS, 1, HIDDEN)),                     # attn RMSNorm weights
            full((N_LAYERS, 1, HIDDEN)),                     # mlp RMSNorm weights
            full((1, HIDDEN)),                               # final RMSNorm weight
            full((N_LAYERS, HIDDEN, QKV_COLS)),              # fused [q|k|v|qR|kR] projection
            full((N_LAYERS, HIDDEN, HIDDEN)),                # O projection
            full((N_LAYERS, HIDDEN, GU_COLS)),               # fused gate|up (128-lane blocks)
            full((N_LAYERS, BLK, HIDDEN)),                   # down projection (zero-padded rows)
            full((HIDDEN, LOGIT_W)),                         # lm_head (lane-padded)
        ],
        out_specs=pl.BlockSpec((1, S, LOGIT_W), lambda b: (b, 0, 0)),
        compiler_params=pltpu.CompilerParams(
            dimension_semantics=("parallel",)),
    )(ids3, bias, cos_t, sin_t, hmask,
      params["embed"], params["attn_norm"], params["mlp_norm"], params["final_norm"],
      wqkv, params["wo"], wgu, wd, lmh)

    return padded[:, :, :VOCAB]


# TODO(synk): tokenizer and checkpoint loading from `model_path` have no Pallas
# equivalent; parameters are synthetic and inputs are pre-tokenized ids.

if __name__ == "__main__":
    key = jax.random.PRNGKey(0)
    pkey, ikey = jax.random.split(key)
    params = init_params(pkey)

    B, S = 2, 8
    input_ids = jax.random.randint(ikey, (B, S), 0, VOCAB, dtype=jnp.int32)
    attention_mask = jnp.array([[1] * S, [1] * (S - 2) + [0] * 2], dtype=jnp.int32)

    logits = jax.jit(llama_forward)(params, input_ids, attention_mask)
    jax.block_until_ready(logits)
    assert logits.shape == (B, S, VOCAB)
    assert logits.dtype == jnp.float32
    assert bool(jnp.all(jnp.isfinite(logits)))
    print("KERNEL_OK")
</pallas_src>

<mosaic_0001>
module attributes {stable_mosaic.version = 11 : i64} {
  func.func @_llama_fwd_kernel(%arg0: i32, %arg1: memref<1x8x1xi32, #tpu.memory_space<vmem>>, %arg2: memref<1x8x32xf32, #tpu.memory_space<vmem>>, %arg3: memref<8x256xf32, #tpu.memory_space<vmem>>, %arg4: memref<8x256xf32, #tpu.memory_space<vmem>>, %arg5: memref<32x32xbf16, #tpu.memory_space<vmem>>, %arg6: memref<64x32xbf16, #tpu.memory_space<vmem>>, %arg7: memref<2x1x32xbf16, #tpu.memory_space<vmem>>, %arg8: memref<2x1x32xbf16, #tpu.memory_space<vmem>>, %arg9: memref<1x32xbf16, #tpu.memory_space<vmem>>, %arg10: memref<2x32x640xbf16, #tpu.memory_space<vmem>>, %arg11: memref<2x32x32xbf16, #tpu.memory_space<vmem>>, %arg12: memref<2x32x256xbf16, #tpu.memory_space<vmem>>, %arg13: memref<2x128x32xbf16, #tpu.memory_space<vmem>>, %arg14: memref<32x128xbf16, #tpu.memory_space<vmem>>, %arg15: memref<1x8x128xf32, #tpu.memory_space<vmem>>) attributes {dimension_semantics = [#tpu.dimension_semantics<parallel>], iteration_bounds = array<i64: 2>, scalar_prefetch = 0 : i64, scratch_operands = 0 : i64, tpu.core_type = #tpu.core_type<tc>, window_params = [{transform_indices = @transform_0, window_bounds = array<i64: 1, 8, 1>}, {transform_indices = @transform_1, window_bounds = array<i64: 1, 8, 32>}, {pipeline_mode = #tpu.pipeline_mode<synchronous>, transform_indices = @transform_2, window_bounds = array<i64: 8, 256>}, {pipeline_mode = #tpu.pipeline_mode<synchronous>, transform_indices = @transform_3, window_bounds = array<i64: 8, 256>}, {pipeline_mode = #tpu.pipeline_mode<synchronous>, transform_indices = @transform_4, window_bounds = array<i64: 32, 32>}, {pipeline_mode = #tpu.pipeline_mode<synchronous>, transform_indices = @transform_5, window_bounds = array<i64: 64, 32>}, {pipeline_mode = #tpu.pipeline_mode<synchronous>, transform_indices = @transform_6, window_bounds = array<i64: 2, 1, 32>}, {pipeline_mode = #tpu.pipeline_mode<synchronous>, transform_indices = @transform_7, window_bounds = array<i64: 2, 1, 32>}, {pipeline_mode = #tpu.pipeline_mode<synchronous>, transform_indices = @transform_8, window_bounds = array<i64: 1, 32>}, {pipeline_mode = #tpu.pipeline_mode<synchronous>, transform_indices = @transform_9, window_bounds = array<i64: 2, 32, 640>}, {pipeline_mode = #tpu.pipeline_mode<synchronous>, transform_indices = @transform_10, window_bounds = array<i64: 2, 32, 32>}, {pipeline_mode = #tpu.pipeline_mode<synchronous>, transform_indices = @transform_11, window_bounds = array<i64: 2, 32, 256>}, {pipeline_mode = #tpu.pipeline_mode<synchronous>, transform_indices = @transform_12, window_bounds = array<i64: 2, 128, 32>}, {pipeline_mode = #tpu.pipeline_mode<synchronous>, transform_indices = @transform_13, window_bounds = array<i64: 32, 128>}, {transform_indices = @transform_14, window_bounds = array<i64: 1, 8, 128>}]} {
    %c0 = arith.constant 0 : index
    %c0_0 = arith.constant 0 : index
    %c0_1 = arith.constant 0 : index
    %0 = vector.load %arg1[%c0, %c0_0, %c0_1] : memref<1x8x1xi32, #tpu.memory_space<vmem>>, vector<1x8x1xi32>
    %1 = vector.shape_cast %0 : vector<1x8x1xi32> to vector<8x1xi32>
    %2 = tpu.iota {dimensions = array<i32: 1>} : vector<8x64xi32>
    %3 = vector.broadcast %1 : vector<8x1xi32> to vector<8x64xi32>
    %4 = arith.cmpi eq, %3, %2 : vector<8x64xi32>
    %5 = arith.extui %4 : vector<8x64xi1> to vector<8x64xi32>
    %6 = arith.sitofp %5 : vector<8x64xi32> to vector<8x64xf32>
    %7 = arith.truncf %6 : vector<8x64xf32> to vector<8x64xbf16>
    %c0_2 = arith.constant 0 : index
    %c0_3 = arith.constant 0 : index
    %8 = vector.load %arg6[%c0_2, %c0_3] : memref<64x32xbf16, #tpu.memory_space<vmem>>, vector<64x32xbf16>
    %cst = arith.constant dense<0.000000e+00> : vector<8x32xf32>
    %9 = tpu.matmul %7, %8, %cst {dimension_numbers = #tpu.dot_dimension_numbers<[1], [0], [0], [1], [0, 0, 1, 1], [], []>} : vector<8x64xbf16>, vector<64x32xbf16>, vector<8x32xf32> -> vector<8x32xf32>
    %10 = arith.truncf %9 : vector<8x32xf32> to vector<8x32xbf16>
    %c0_4 = arith.constant 0 : index
    %c0_5 = arith.constant 0 : index
    %c0_6 = arith.constant 0 : index
    %11 = vector.load %arg2[%c0_4, %c0_5, %c0_6] : memref<1x8x32xf32, #tpu.memory_space<vmem>>, vector<1x8x32xf32>
    %12 = vector.shape_cast %11 : vector<1x8x32xf32> to vector<8x32xf32>
    %c0_7 = arith.constant 0 : index
    %c0_8 = arith.constant 0 : index
    %13 = vector.load %arg5[%c0_7, %c0_8] : memref<32x32xbf16, #tpu.memory_space<vmem>>, vector<32x32xbf16>
    %c0_9 = arith.constant 0 : index
    %c0_10 = arith.constant 0 : index
    %14 = vector.load %arg3[%c0_9, %c0_10] : memref<8x256xf32, #tpu.memory_space<vmem>>, vector<8x256xf32>
    %c0_11 = arith.constant 0 : index
    %c0_12 = arith.constant 0 : index
    %15 = vector.load %arg4[%c0_11, %c0_12] : memref<8x256xf32, #tpu.memory_space<vmem>>, vector<8x256xf32>
    %c0_13 = arith.constant 0 : index
    %c0_14 = arith.constant 0 : index
    %c0_15 = arith.constant 0 : index
    %16 = vector.load %arg7[%c0_13, %c0_14, %c0_15] : memref<2x1x32xbf16, #tpu.memory_space<vmem>>, vector<1x1x32xbf16>
    %17 = vector.shape_cast %16 : vector<1x1x32xbf16> to vector<1x32xbf16>
    %18 = arith.extf %10 : vector<8x32xbf16> to vector<8x32xf32>
    %19 = arith.mulf %18, %18 : vector<8x32xf32>
    %cst_16 = arith.constant dense<0.000000e+00> : vector<8xf32>
    %20 = vector.multi_reduction <add>, %19, %cst_16 [1] : vector<8x32xf32> to vector<8xf32>
    %21 = vector.shape_cast %20 : vector<8xf32> to vector<8x1xf32>
    %cst_17 = arith.constant 3.200000e+01 : f32
    %22 = vector.broadcast %cst_17 : f32 to vector<8x1xf32>
    %23 = arith.divf %21, %22 : vector<8x1xf32>
    %cst_18 = arith.constant 9.99999974E-6 : f32
    %24 = vector.broadcast %cst_18 : f32 to vector<8x1xf32>
    %25 = arith.addf %23, %24 : vector<8x1xf32>
    %26 = math.rsqrt %25 : vector<8x1xf32>
    %27 = vector.broadcast %26 : vector<8x1xf32> to vector<8x32xf32>
    %28 = arith.mulf %18, %27 : vector<8x32xf32>
    %29 = arith.truncf %28 : vector<8x32xf32> to vector<8x32xbf16>
    %30 = vector.broadcast %17 : vector<1x32xbf16> to vector<8x32xbf16>
    %31 = arith.mulf %29, %30 : vector<8x32xbf16>
    %c0_19 = arith.constant 0 : index
    %c0_20 = arith.constant 0 : index
    %c0_21 = arith.constant 0 : index
    %32 = vector.load %arg10[%c0_19, %c0_20, %c0_21] : memref<2x32x640xbf16, #tpu.memory_space<vmem>>, vector<1x32x640xbf16>
    %33 = vector.shape_cast %32 : vector<1x32x640xbf16> to vector<32x640xbf16>
    %cst_22 = arith.constant dense<0.000000e+00> : vector<8x640xf32>
    %34 = tpu.matmul %31, %33, %cst_22 {dimension_numbers = #tpu.dot_dimension_numbers<[1], [0], [0], [1], [0, 0, 1, 1], [], []>} : vector<8x32xbf16>, vector<32x640xbf16>, vector<8x640xf32> -> vector<8x640xf32>
    %35 = vector.extract_strided_slice %34 {offsets = [0, 0], sizes = [8, 256], strides = [1, 1]} : vector<8x640xf32> to vector<8x256xf32>
    %36 = arith.mulf %35, %14 : vector<8x256xf32>
    %37 = vector.extract_strided_slice %34 {offsets = [0, 384], sizes = [8, 256], strides = [1, 1]} : vector<8x640xf32> to vector<8x256xf32>
    %38 = arith.mulf %37, %15 : vector<8x256xf32>
    %39 = arith.addf %36, %38 : vector<8x256xf32>
    %40 = vector.extract_strided_slice %39 {offsets = [0, 0], sizes = [8, 32], strides = [1, 1]} : vector<8x256xf32> to vector<8x32xf32>
    %41 = arith.truncf %40 : vector<8x32xf32> to vector<8x32xbf16>
    %42 = vector.extract_strided_slice %39 {offsets = [0, 128], sizes = [8, 32], strides = [1, 1]} : vector<8x256xf32> to vector<8x32xf32>
    %43 = arith.truncf %42 : vector<8x32xf32> to vector<8x32xbf16>
    %44 = vector.extract_strided_slice %34 {offsets = [0, 256], sizes = [8, 32], strides = [1, 1]} : vector<8x640xf32> to vector<8x32xf32>
    %45 = arith.truncf %44 : vector<8x32xf32> to vector<8x32xbf16>
    %46 = tpu.concatenate %43, %43, %43, %43 in 0 : vector<8x32xbf16>, vector<8x32xbf16>, vector<8x32xbf16>, vector<8x32xbf16> -> vector<32x32xbf16>
    %47 = arith.mulf %46, %13 : vector<32x32xbf16>
    "tpu.trace_start"() <{level = 10 : i32, message = "sc,jc->sj"}> : () -> ()
    %cst_23 = arith.constant dense<0.000000e+00> : vector<8x32xf32>
    %48 = tpu.matmul %41, %47, %cst_23 {dimension_numbers = #tpu.dot_dimension_numbers<[1], [1], [0], [0], [0, 0, 1, 0], [], []>} : vector<8x32xbf16>, vector<32x32xbf16>, vector<8x32xf32> -> vector<8x32xf32>
    "tpu.trace_stop"() : () -> ()
    %49 = arith.addf %48, %12 : vector<8x32xf32>
    %cst_24 = arith.constant dense<0xFF800000> : vector<8xf32>
    %50 = vector.multi_reduction <maximumf>, %49, %cst_24 [1] : vector<8x32xf32> to vector<8xf32>
    %51 = vector.shape_cast %50 : vector<8xf32> to vector<8x1xf32>
    %52 = vector.broadcast %51 : vector<8x1xf32> to vector<8x32xf32>
    %53 = arith.subf %49, %52 : vector<8x32xf32>
    %54 = math.exp %53 : vector<8x32xf32>
    %55 = arith.truncf %54 : vector<8x32xf32> to vector<8x32xbf16>
    %56 = tpu.concatenate %45, %45, %45, %45 in 0 : vector<8x32xbf16>, vector<8x32xbf16>, vector<8x32xbf16>, vector<8x32xbf16> -> vector<32x32xbf16>
    %57 = arith.mulf %56, %13 : vector<32x32xbf16>
    %cst_25 = arith.constant dense<0.000000e+00> : vector<8x32xf32>
    %58 = tpu.matmul %55, %57, %cst_25 {dimension_numbers = #tpu.dot_dimension_numbers<[1], [0], [0], [1], [0, 0, 1, 1], [], []>} : vector<8x32xbf16>, vector<32x32xbf16>, vector<8x32xf32> -> vector<8x32xf32>
    %cst_26 = arith.constant dense<0.000000e+00> : vector<8x32xf32>
    %59 = tpu.matmul %55, %13, %cst_26 {dimension_numbers = #tpu.dot_dimension_numbers<[1], [0], [0], [1], [0, 0, 1, 1], [], []>} : vector<8x32xbf16>, vector<32x32xbf16>, vector<8x32xf32> -> vector<8x32xf32>
    %cst_27 = arith.constant 9.99999968E-21 : f32
    %60 = vector.broadcast %cst_27 : f32 to vector<8x32xf32>
    %61 = arith.maximumf %59, %60 : vector<8x32xf32>
    %62 = tpu.reciprocal %61 {approx = true} : vector<8x32xf32> -> vector<8x32xf32>
    %63 = arith.mulf %58, %62 : vector<8x32xf32>
    %64 = arith.truncf %63 : vector<8x32xf32> to vector<8x32xbf16>
    %c0_28 = arith.constant 0 : index
    %c0_29 = arith.constant 0 : index
    %c0_30 = arith.constant 0 : index
    %65 = vector.load %arg11[%c0_28, %c0_29, %c0_30] : memref<2x32x32xbf16, #tpu.memory_space<vmem>>, vector<1x32x32xbf16>
    %66 = vector.shape_cast %65 : vector<1x32x32xbf16> to vector<32x32xbf16>
    %cst_31 = arith.constant dense<0.000000e+00> : vector<8x32xf32>
    %67 = tpu.matmul %64, %66, %cst_31 {dimension_numbers = #tpu.dot_dimension_numbers<[1], [0], [0], [1], [0, 0, 1, 1], [], []>} : vector<8x32xbf16>, vector<32x32xbf16>, vector<8x32xf32> -> vector<8x32xf32>
    %68 = arith.truncf %67 : vector<8x32xf32> to vector<8x32xbf16>
    %69 = arith.addf %10, %68 : vector<8x32xbf16>
    %c0_32 = arith.constant 0 : index
    %c0_33 = arith.constant 0 : index
    %c0_34 = arith.constant 0 : index
    %70 = vector.load %arg8[%c0_32, %c0_33, %c0_34] : memref<2x1x32xbf16, #tpu.memory_space<vmem>>, vector<1x1x32xbf16>
    %71 = vector.shape_cast %70 : vector<1x1x32xbf16> to vector<1x32xbf16>
    %72 = arith.extf %69 : vector<8x32xbf16> to vector<8x32xf32>
    %73 = arith.mulf %72, %72 : vector<8x32xf32>
    %cst_35 = arith.constant dense<0.000000e+00> : vector<8xf32>
    %74 = vector.multi_reduction <add>, %73, %cst_35 [1] : vector<8x32xf32> to vector<8xf32>
    %75 = vector.shape_cast %74 : vector<8xf32> to vector<8x1xf32>
    %cst_36 = arith.constant 3.200000e+01 : f32
    %76 = vector.broadcast %cst_36 : f32 to vector<8x1xf32>
    %77 = arith.divf %75, %76 : vector<8x1xf32>
    %cst_37 = arith.constant 9.99999974E-6 : f32
    %78 = vector.broadcast %cst_37 : f32 to vector<8x1xf32>
    %79 = arith.addf %77, %78 : vector<8x1xf32>
    %80 = math.rsqrt %79 : vector<8x1xf32>
    %81 = vector.broadcast %80 : vector<8x1xf32> to vector<8x32xf32>
    %82 = arith.mulf %72, %81 : vector<8x32xf32>
    %83 = arith.truncf %82 : vector<8x32xf32> to vector<8x32xbf16>
    %84 = vector.broadcast %71 : vector<1x32xbf16> to vector<8x32xbf16>
    %85 = arith.mulf %83, %84 : vector<8x32xbf16>
    %c0_38 = arith.constant 0 : index
    %c0_39 = arith.constant 0 : index
    %c0_40 = arith.constant 0 : index
    %86 = vector.load %arg12[%c0_38, %c0_39, %c0_40] : memref<2x32x256xbf16, #tpu.memory_space<vmem>>, vector<1x32x256xbf16>
    %87 = vector.shape_cast %86 : vector<1x32x256xbf16> to vector<32x256xbf16>
    %cst_41 = arith.constant dense<0.000000e+00> : vector<8x256xf32>
    %88 = tpu.matmul %85, %87, %cst_41 {dimension_numbers = #tpu.dot_dimension_numbers<[1], [0], [0], [1], [0, 0, 1, 1], [], []>} : vector<8x32xbf16>, vector<32x256xbf16>, vector<8x256xf32> -> vector<8x256xf32>
    %89 = vector.extract_strided_slice %88 {offsets = [0, 0], sizes = [8, 128], strides = [1, 1]} : vector<8x256xf32> to vector<8x128xf32>
    %90 = vector.extract_strided_slice %88 {offsets = [0, 128], sizes = [8, 128], strides = [1, 1]} : vector<8x256xf32> to vector<8x128xf32>
    %91 = arith.negf %89 : vector<8x128xf32>
    %92 = math.exp %91 : vector<8x128xf32>
    %cst_42 = arith.constant 1.000000e+00 : f32
    %93 = vector.broadcast %cst_42 : f32 to vector<8x128xf32>
    %94 = arith.addf %93, %92 : vector<8x128xf32>
    %95 = arith.divf %93, %94 : vector<8x128xf32>
    %96 = arith.mulf %89, %95 : vector<8x128xf32>
    %97 = arith.mulf %96, %90 : vector<8x128xf32>
    %98 = arith.truncf %97 : vector<8x128xf32> to vector<8x128xbf16>
    %c0_43 = arith.constant 0 : index
    %c0_44 = arith.constant 0 : index
    %c0_45 = arith.constant 0 : index
    %99 = vector.load %arg13[%c0_43, %c0_44, %c0_45] : memref<2x128x32xbf16, #tpu.memory_space<vmem>>, vector<1x128x32xbf16>
    %100 = vector.shape_cast %99 : vector<1x128x32xbf16> to vector<128x32xbf16>
    %cst_46 = arith.constant dense<0.000000e+00> : vector<8x32xf32>
    %101 = tpu.matmul %98, %100, %cst_46 {dimension_numbers = #tpu.dot_dimension_numbers<[1], [0], [0], [1], [0, 0, 1, 1], [], []>} : vector<8x128xbf16>, vector<128x32xbf16>, vector<8x32xf32> -> vector<8x32xf32>
    %102 = arith.truncf %101 : vector<8x32xf32> to vector<8x32xbf16>
    %103 = arith.addf %69, %102 : vector<8x32xbf16>
    %c1 = arith.constant 1 : index
    %c0_47 = arith.constant 0 : index
    %c0_48 = arith.constant 0 : index
    %104 = vector.load %arg7[%c1, %c0_47, %c0_48] : memref<2x1x32xbf16, #tpu.memory_space<vmem>>, vector<1x1x32xbf16>
    %105 = vector.shape_cast %104 : vector<1x1x32xbf16> to vector<1x32xbf16>
    %106 = arith.extf %103 : vector<8x32xbf16> to vector<8x32xf32>
    %107 = arith.mulf %106, %106 : vector<8x32xf32>
    %cst_49 = arith.constant dense<0.000000e+00> : vector<8xf32>
    %108 = vector.multi_reduction <add>, %107, %cst_49 [1] : vector<8x32xf32> to vector<8xf32>
    %109 = vector.shape_cast %108 : vector<8xf32> to vector<8x1xf32>
    %cst_50 = arith.constant 3.200000e+01 : f32
    %110 = vector.broadcast %cst_50 : f32 to vector<8x1xf32>
    %111 = arith.divf %109, %110 : vector<8x1xf32>
    %cst_51 = arith.constant 9.99999974E-6 : f32
    %112 = vector.broadcast %cst_51 : f32 to vector<8x1xf32>
    %113 = arith.addf %111, %112 : vector<8x1xf32>
    %114 = math.rsqrt %113 : vector<8x1xf32>
    %115 = vector.broadcast %114 : vector<8x1xf32> to vector<8x32xf32>
    %116 = arith.mulf %106, %115 : vector<8x32xf32>
    %117 = arith.truncf %116 : vector<8x32xf32> to vector<8x32xbf16>
    %118 = vector.broadcast %105 : vector<1x32xbf16> to vector<8x32xbf16>
    %119 = arith.mulf %117, %118 : vector<8x32xbf16>
    %c1_52 = arith.constant 1 : index
    %c0_53 = arith.constant 0 : index
    %c0_54 = arith.constant 0 : index
    %120 = vector.load %arg10[%c1_52, %c0_53, %c0_54] : memref<2x32x640xbf16, #tpu.memory_space<vmem>>, vector<1x32x640xbf16>
    %121 = vector.shape_cast %120 : vector<1x32x640xbf16> to vector<32x640xbf16>
    %cst_55 = arith.constant dense<0.000000e+00> : vector<8x640xf32>
    %122 = tpu.matmul %119, %121, %cst_55 {dimension_numbers = #tpu.dot_dimension_numbers<[1], [0], [0], [1], [0, 0, 1, 1], [], []>} : vector<8x32xbf16>, vector<32x640xbf16>, vector<8x640xf32> -> vector<8x640xf32>
    %123 = vector.extract_strided_slice %122 {offsets = [0, 0], sizes = [8, 256], strides = [1, 1]} : vector<8x640xf32> to vector<8x256xf32>
    %124 = arith.mulf %123, %14 : vector<8x256xf32>
    %125 = vector.extract_strided_slice %122 {offsets = [0, 384], sizes = [8, 256], strides = [1, 1]} : vector<8x640xf32> to vector<8x256xf32>
    %126 = arith.mulf %125, %15 : vector<8x256xf32>
    %127 = arith.addf %124, %126 : vector<8x256xf32>
    %128 = vector.extract_strided_slice %127 {offsets = [0, 0], sizes = [8, 32], strides = [1, 1]} : vector<8x256xf32> to vector<8x32xf32>
    %129 = arith.truncf %128 : vector<8x32xf32> to vector<8x32xbf16>
    %130 = vector.extract_strided_slice %127 {offsets = [0, 128], sizes = [8, 32], strides = [1, 1]} : vector<8x256xf32> to vector<8x32xf32>
    %131 = arith.truncf %130 : vector<8x32xf32> to vector<8x32xbf16>
    %132 = vector.extract_strided_slice %122 {offsets = [0, 256], sizes = [8, 32], strides = [1, 1]} : vector<8x640xf32> to vector<8x32xf32>
    %133 = arith.truncf %132 : vector<8x32xf32> to vector<8x32xbf16>
    %134 = tpu.concatenate %131, %131, %131, %131 in 0 : vector<8x32xbf16>, vector<8x32xbf16>, vector<8x32xbf16>, vector<8x32xbf16> -> vector<32x32xbf16>
    %135 = arith.mulf %134, %13 : vector<32x32xbf16>
    "tpu.trace_start"() <{level = 10 : i32, message = "sc,jc->sj"}> : () -> ()
    %cst_56 = arith.constant dense<0.000000e+00> : vector<8x32xf32>
    %136 = tpu.matmul %129, %135, %cst_56 {dimension_numbers = #tpu.dot_dimension_numbers<[1], [1], [0], [0], [0, 0, 1, 0], [], []>} : vector<8x32xbf16>, vector<32x32xbf16>, vector<8x32xf32> -> vector<8x32xf32>
    "tpu.trace_stop"() : () -> ()
    %137 = arith.addf %136, %12 : vector<8x32xf32>
    %cst_57 = arith.constant dense<0xFF800000> : vector<8xf32>
    %138 = vector.multi_reduction <maximumf>, %137, %cst_57 [1] : vector<8x32xf32> to vector<8xf32>
    %139 = vector.shape_cast %138 : vector<8xf32> to vector<8x1xf32>
    %140 = vector.broadcast %139 : vector<8x1xf32> to vector<8x32xf32>
    %141 = arith.subf %137, %140 : vector<8x32xf32>
    %142 = math.exp %141 : vector<8x32xf32>
    %143 = arith.truncf %142 : vector<8x32xf32> to vector<8x32xbf16>
    %144 = tpu.concatenate %133, %133, %133, %133 in 0 : vector<8x32xbf16>, vector<8x32xbf16>, vector<8x32xbf16>, vector<8x32xbf16> -> vector<32x32xbf16>
    %145 = arith.mulf %144, %13 : vector<32x32xbf16>
    %cst_58 = arith.constant dense<0.000000e+00> : vector<8x32xf32>
    %146 = tpu.matmul %143, %145, %cst_58 {dimension_numbers = #tpu.dot_dimension_numbers<[1], [0], [0], [1], [0, 0, 1, 1], [], []>} : vector<8x32xbf16>, vector<32x32xbf16>, vector<8x32xf32> -> vector<8x32xf32>
    %cst_59 = arith.constant dense<0.000000e+00> : vector<8x32xf32>
    %147 = tpu.matmul %143, %13, %cst_59 {dimension_numbers = #tpu.dot_dimension_numbers<[1], [0], [0], [1], [0, 0, 1, 1], [], []>} : vector<8x32xbf16>, vector<32x32xbf16>, vector<8x32xf32> -> vector<8x32xf32>
    %cst_60 = arith.constant 9.99999968E-21 : f32
    %148 = vector.broadcast %cst_60 : f32 to vector<8x32xf32>
    %149 = arith.maximumf %147, %148 : vector<8x32xf32>
    %150 = tpu.reciprocal %149 {approx = true} : vector<8x32xf32> -> vector<8x32xf32>
    %151 = arith.mulf %146, %150 : vector<8x32xf32>
    %152 = arith.truncf %151 : vector<8x32xf32> to vector<8x32xbf16>
    %c1_61 = arith.constant 1 : index
    %c0_62 = arith.constant 0 : index
    %c0_63 = arith.constant 0 : index
    %153 = vector.load %arg11[%c1_61, %c0_62, %c0_63] : memref<2x32x32xbf16, #tpu.memory_space<vmem>>, vector<1x32x32xbf16>
    %154 = vector.shape_cast %153 : vector<1x32x32xbf16> to vector<32x32xbf16>
    %cst_64 = arith.constant dense<0.000000e+00> : vector<8x32xf32>
    %155 = tpu.matmul %152, %154, %cst_64 {dimension_numbers = #tpu.dot_dimension_numbers<[1], [0], [0], [1], [0, 0, 1, 1], [], []>} : vector<8x32xbf16>, vector<32x32xbf16>, vector<8x32xf32> -> vector<8x32xf32>
    %156 = arith.truncf %155 : vector<8x32xf32> to vector<8x32xbf16>
    %157 = arith.addf %103, %156 : vector<8x32xbf16>
    %c1_65 = arith.constant 1 : index
    %c0_66 = arith.constant 0 : index
    %c0_67 = arith.constant 0 : index
    %158 = vector.load %arg8[%c1_65, %c0_66, %c0_67] : memref<2x1x32xbf16, #tpu.memory_space<vmem>>, vector<1x1x32xbf16>
    %159 = vector.shape_cast %158 : vector<1x1x32xbf16> to vector<1x32xbf16>
    %160 = arith.extf %157 : vector<8x32xbf16> to vector<8x32xf32>
    %161 = arith.mulf %160, %160 : vector<8x32xf32>
    %cst_68 = arith.constant dense<0.000000e+00> : vector<8xf32>
    %162 = vector.multi_reduction <add>, %161, %cst_68 [1] : vector<8x32xf32> to vector<8xf32>
    %163 = vector.shape_cast %162 : vector<8xf32> to vector<8x1xf32>
    %cst_69 = arith.constant 3.200000e+01 : f32
    %164 = vector.broadcast %cst_69 : f32 to vector<8x1xf32>
    %165 = arith.divf %163, %164 : vector<8x1xf32>
    %cst_70 = arith.constant 9.99999974E-6 : f32
    %166 = vector.broadcast %cst_70 : f32 to vector<8x1xf32>
    %167 = arith.addf %165, %166 : vector<8x1xf32>
    %168 = math.rsqrt %167 : vector<8x1xf32>
    %169 = vector.broadcast %168 : vector<8x1xf32> to vector<8x32xf32>
    %170 = arith.mulf %160, %169 : vector<8x32xf32>
    %171 = arith.truncf %170 : vector<8x32xf32> to vector<8x32xbf16>
    %172 = vector.broadcast %159 : vector<1x32xbf16> to vector<8x32xbf16>
    %173 = arith.mulf %171, %172 : vector<8x32xbf16>
    %c1_71 = arith.constant 1 : index
    %c0_72 = arith.constant 0 : index
    %c0_73 = arith.constant 0 : index
    %174 = vector.load %arg12[%c1_71, %c0_72, %c0_73] : memref<2x32x256xbf16, #tpu.memory_space<vmem>>, vector<1x32x256xbf16>
    %175 = vector.shape_cast %174 : vector<1x32x256xbf16> to vector<32x256xbf16>
    %cst_74 = arith.constant dense<0.000000e+00> : vector<8x256xf32>
    %176 = tpu.matmul %173, %175, %cst_74 {dimension_numbers = #tpu.dot_dimension_numbers<[1], [0], [0], [1], [0, 0, 1, 1], [], []>} : vector<8x32xbf16>, vector<32x256xbf16>, vector<8x256xf32> -> vector<8x256xf32>
    %177 = vector.extract_strided_slice %176 {offsets = [0, 0], sizes = [8, 128], strides = [1, 1]} : vector<8x256xf32> to vector<8x128xf32>
    %178 = vector.extract_strided_slice %176 {offsets = [0, 128], sizes = [8, 128], strides = [1, 1]} : vector<8x256xf32> to vector<8x128xf32>
    %179 = arith.negf %177 : vector<8x128xf32>
    %180 = math.exp %179 : vector<8x128xf32>
    %cst_75 = arith.constant 1.000000e+00 : f32
    %181 = vector.broadcast %cst_75 : f32 to vector<8x128xf32>
    %182 = arith.addf %181, %180 : vector<8x128xf32>
    %183 = arith.divf %181, %182 : vector<8x128xf32>
    %184 = arith.mulf %177, %183 : vector<8x128xf32>
    %185 = arith.mulf %184, %178 : vector<8x128xf32>
    %186 = arith.truncf %185 : vector<8x128xf32> to vector<8x128xbf16>
    %c1_76 = arith.constant 1 : index
    %c0_77 = arith.constant 0 : index
    %c0_78 = arith.constant 0 : index
    %187 = vector.load %arg13[%c1_76, %c0_77, %c0_78] : memref<2x128x32xbf16, #tpu.memory_space<vmem>>, vector<1x128x32xbf16>
    %188 = vector.shape_cast %187 : vector<1x128x32xbf16> to vector<128x32xbf16>
    %cst_79 = arith.constant dense<0.000000e+00> : vector<8x32xf32>
    %189 = tpu.matmul %186, %188, %cst_79 {dimension_numbers = #tpu.dot_dimension_numbers<[1], [0], [0], [1], [0, 0, 1, 1], [], []>} : vector<8x128xbf16>, vector<128x32xbf16>, vector<8x32xf32> -> vector<8x32xf32>
    %190 = arith.truncf %189 : vector<8x32xf32> to vector<8x32xbf16>
    %191 = arith.addf %157, %190 : vector<8x32xbf16>
    %c0_80 = arith.constant 0 : index
    %c0_81 = arith.constant 0 : index
    %192 = vector.load %arg9[%c0_80, %c0_81] : memref<1x32xbf16, #tpu.memory_space<vmem>>, vector<1x32xbf16>
    %193 = arith.extf %191 : vector<8x32xbf16> to vector<8x32xf32>
    %194 = arith.mulf %193, %193 : vector<8x32xf32>
    %cst_82 = arith.constant dense<0.000000e+00> : vector<8xf32>
    %195 = vector.multi_reduction <add>, %194, %cst_82 [1] : vector<8x32xf32> to vector<8xf32>
    %196 = vector.shape_cast %195 : vector<8xf32> to vector<8x1xf32>
    %cst_83 = arith.constant 3.200000e+01 : f32
    %197 = vector.broadcast %cst_83 : f32 to vector<8x1xf32>
    %198 = arith.divf %196, %197 : vector<8x1xf32>
    %cst_84 = arith.constant 9.99999974E-6 : f32
    %199 = vector.broadcast %cst_84 : f32 to vector<8x1xf32>
    %200 = arith.addf %198, %199 : vector<8x1xf32>
    %201 = math.rsqrt %200 : vector<8x1xf32>
    %202 = vector.broadcast %201 : vector<8x1xf32> to vector<8x32xf32>
    %203 = arith.mulf %193, %202 : vector<8x32xf32>
    %204 = arith.truncf %203 : vector<8x32xf32> to vector<8x32xbf16>
    %205 = vector.broadcast %192 : vector<1x32xbf16> to vector<8x32xbf16>
    %206 = arith.mulf %204, %205 : vector<8x32xbf16>
    %c0_85 = arith.constant 0 : index
    %c0_86 = arith.constant 0 : index
    %207 = vector.load %arg14[%c0_85, %c0_86] : memref<32x128xbf16, #tpu.memory_space<vmem>>, vector<32x128xbf16>
    %cst_87 = arith.constant dense<0.000000e+00> : vector<8x128xf32>
    %208 = tpu.matmul %206, %207, %cst_87 {dimension_numbers = #tpu.dot_dimension_numbers<[1], [0], [0], [1], [0, 0, 1, 1], [], []>} : vector<8x32xbf16>, vector<32x128xbf16>, vector<8x128xf32> -> vector<8x128xf32>
    %c0_88 = arith.constant 0 : index
    %c0_89 = arith.constant 0 : index
    %c0_90 = arith.constant 0 : index
    %209 = vector.load %arg15[%c0_88, %c0_89, %c0_90] : memref<1x8x128xf32, #tpu.memory_space<vmem>>, vector<1x8x128xf32>
    %210 = vector.shape_cast %209 : vector<1x8x128xf32> to vector<8x128xf32>
    %211 = vector.shape_cast %208 : vector<8x128xf32> to vector<1x8x128xf32>
    tpu.vector_store %arg15[%c0_88, %c0_89, %c0_90], %211 {strides = array<i32>} : memref<1x8x128xf32, #tpu.memory_space<vmem>>, vector<1x8x128xf32>,
    return
  }
  func.func @transform_0(%arg0: i32) -> (i32, i32, i32) {
    %c0_i32 = arith.constant 0 : i32
    %c0_i32_0 = arith.constant 0 : i32
    %c0_i32_1 = arith.constant 0 : i32
    return %arg0, %c0_i32, %c0_i32_0 : i32, i32, i32
  }
  func.func @transform_1(%arg0: i32) -> (i32, i32, i32) {
    %c0_i32 = arith.constant 0 : i32
    %c0_i32_0 = arith.constant 0 : i32
    %c0_i32_1 = arith.constant 0 : i32
    return %arg0, %c0_i32, %c0_i32_0 : i32, i32, i32
  }
  func.func @transform_2(%arg0: i32) -> (i32, i32) {
    %c0_i32 = arith.constant 0 : i32
    %c0_i32_0 = arith.constant 0 : i32
    %c0_i32_1 = arith.constant 0 : i32
    return %c0_i32, %c0_i32_0 : i32, i32
  }
  func.func @transform_3(%arg0: i32) -> (i32, i32) {
    %c0_i32 = arith.constant 0 : i32
    %c0_i32_0 = arith.constant 0 : i32
    %c0_i32_1 = arith.constant 0 : i32
    return %c0_i32, %c0_i32_0 : i32, i32
  }
  func.func @transform_4(%arg0: i32) -> (i32, i32) {
    %c0_i32 = arith.constant 0 : i32
    %c0_i32_0 = arith.constant 0 : i32
    %c0_i32_1 = arith.constant 0 : i32
    return %c0_i32, %c0_i32_0 : i32, i32
  }
  func.func @transform_5(%arg0: i32) -> (i32, i32) {
    %c0_i32 = arith.constant 0 : i32
    %c0_i32_0 = arith.constant 0 : i32
    %c0_i32_1 = arith.constant 0 : i32
    return %c0_i32, %c0_i32_0 : i32, i32
  }
  func.func @transform_6(%arg0: i32) -> (i32, i32, i32) {
    %c0_i32 = arith.constant 0 : i32
    %c0_i32_0 = arith.constant 0 : i32
    %c0_i32_1 = arith.constant 0 : i32
    %c0_i32_2 = arith.constant 0 : i32
    return %c0_i32, %c0_i32_0, %c0_i32_1 : i32, i32, i32
  }
  func.func @transform_7(%arg0: i32) -> (i32, i32, i32) {
    %c0_i32 = arith.constant 0 : i32
    %c0_i32_0 = arith.constant 0 : i32
    %c0_i32_1 = arith.constant 0 : i32
    %c0_i32_2 = arith.constant 0 : i32
    return %c0_i32, %c0_i32_0, %c0_i32_1 : i32, i32, i32
  }
  func.func @transform_8(%arg0: i32) -> (i32, i32) {
    %c0_i32 = arith.constant 0 : i32
    %c0_i32_0 = arith.constant 0 : i32
    %c0_i32_1 = arith.constant 0 : i32
    return %c0_i32, %c0_i32_0 : i32, i32
  }
  func.func @transform_9(%arg0: i32) -> (i32, i32, i32) {
    %c0_i32 = arith.constant 0 : i32
    %c0_i32_0 = arith.constant 0 : i32
    %c0_i32_1 = arith.constant 0 : i32
    %c0_i32_2 = arith.constant 0 : i32
    return %c0_i32, %c0_i32_0, %c0_i32_1 : i32, i32, i32
  }
  func.func @transform_10(%arg0: i32) -> (i32, i32, i32) {
    %c0_i32 = arith.constant 0 : i32
    %c0_i32_0 = arith.constant 0 : i32
    %c0_i32_1 = arith.constant 0 : i32
    %c0_i32_2 = arith.constant 0 : i32
    return %c0_i32, %c0_i32_0, %c0_i32_1 : i32, i32, i32
  }
  func.func @transform_11(%arg0: i32) -> (i32, i32, i32) {
    %c0_i32 = arith.constant 0 : i32
    %c0_i32_0 = arith.constant 0 : i32
    %c0_i32_1 = arith.constant 0 : i32
    %c0_i32_2 = arith.constant 0 : i32
    return %c0_i32, %c0_i32_0, %c0_i32_1 : i32, i32, i32
  }
  func.func @transform_12(%arg0: i32) -> (i32, i32, i32) {
    %c0_i32 = arith.constant 0 : i32
    %c0_i32_0 = arith.constant 0 : i32
    %c0_i32_1 = arith.constant 0 : i32
    %c0_i32_2 = arith.constant 0 : i32
    return %c0_i32, %c0_i32_0, %c0_i32_1 : i32, i32, i32
  }
  func.func @transform_13(%arg0: i32) -> (i32, i32) {
    %c0_i32 = arith.constant 0 : i32
    %c0_i32_0 = arith.constant 0 : i32
    %c0_i32_1 = arith.constant 0 : i32
    return %c0_i32, %c0_i32_0 : i32, i32
  }
  func.func @transform_14(%arg0: i32) -> (i32, i32, i32) {
    %c0_i32 = arith.constant 0 : i32
    %c0_i32_0 = arith.constant 0 : i32
    %c0_i32_1 = arith.constant 0 : i32
    return %arg0, %c0_i32, %c0_i32_0 : i32, i32, i32
  }
}

</mosaic_0001>

<bundles_post_ra>
// kernel: tile.19
= control target key start
LH: loop header
LB: loop body
LE: loop exit
PB: predicated region body
PF: predicated region fallthrough
CT: control target
= control target key end

     0   :  { %vm42_vm0 = vcmask 1047556   ;;  %vm44_vm1 = vcmask 64512   ;;  %s93_s22 = smov 8   ;;  %s94_s25 = smov 16   ;;  %vm54_vm2 = vcmask 261312   ;;  %vm64_vm3 = vcmask 195712   ;;  %s146_s0 = inlined_call_operand.vmem [shape: f32[8,4,8], index: 0, kind: input, shape index: {}]   ;;  %s147_s1 = inlined_call_operand.vmem [shape: f32[8,32], index: 1, kind: output, shape index: {}]  }
   0x1   :  { %v82_v0 = vld [vmem:[%s146_s0 + $0x1c] sm:$0xf]  ;;  %v83_v1 = vld [vmem:[%s146_s0 + $0x18] sm:$0xf]  ;;  %v84_v2 = vld [vmem:[%s146_s0 + $0x14] sm:$0xf] }
   0x2   :  { %8 = vst [vmem:[#allocation0 + $0x38] sm:$0xf] %v82_v0  ;;  %13 = vst [vmem:[#allocation0 + $0x30] sm:$0xf] %v83_v1  ;;  %v85_v3 = vld [vmem:[%s146_s0 + $0x10] sm:$0xf] }
   0x3   :  { %18 = vst [vmem:[#allocation0 + $0x28] sm:$0xf] %v84_v2  ;;  %v86_v4 = vld [vmem:[%s146_s0 + $0xc] sm:$0xf]  ;;  %v87_v5 = vld [vmem:[%s146_s0 + $0x8] sm:$0xf] }
   0x4   :  { %23 = vst [vmem:[#allocation0 + $0x20] sm:$0xf] %v85_v3  ;;  %28 = vst [vmem:[#allocation0 + $0x18] sm:$0xf] %v86_v4  ;;  %v88_v6 = vld [vmem:[%s146_s0 + $0x4] sm:$0xf] }
   0x5   :  { %33 = vst [vmem:[#allocation0 + $0x10] sm:$0xf] %v87_v5  ;;  %v38_v7 = vld [vmem:[%s146_s0] sm:$0xf]  ;;  %37 = vst [vmem:[#allocation0 + $0x8] sm:$0xf] %v88_v6 }
   0x6   :  { %39 = vst [vmem:[#allocation0] sm:$0xf] %v38_v7  ;;  %s92_s0 = smov 24   ;;  %vm74_vm4 = vcmask 130112  }
   0xb   :  { %v49_v8 = vld [vmem:[#allocation0 + $0x3] ss:$8 sm:$0xf0]   ;;  %v59_v9 = vld [vmem:[#allocation0 + $0x2] ss:$8 sm:$0xf0]  }
   0xc   :  { %v69_v14 = vld [vmem:[#allocation0 + $0x1] ss:$8 sm:$0xf0]   ;;  %v41_v17 = vld [vmem:[#allocation0] ss:$8 sm:$0xf0]  }
   0xd   :  { %v47_v10 = vld [vmem:[#allocation0 + $0x3] ss:$8 sm:$0xf]   ;;  %v57_v11 = vld [vmem:[#allocation0 + $0x2] ss:$8 sm:$0xf]  }
   0xe   :  { %v51_v12 = vsel %vm42_vm0, %v49_v8, %v47_v10  ;;  %v67_v13 = vld [vmem:[#allocation0 + $0x1] ss:$8 sm:$0xf]   ;;  %v40_v16 = vld [vmem:[#allocation0] ss:$8 sm:$0xf]   ;;  %v61_v18 = vsel %vm42_vm0, %v59_v9, %v57_v11 }
   0xf   :  { %52 = vrot.lane.b32.xlu0 %v51_v12, %s92_s0  ;;  %v71_v15 = vsel %vm42_vm0, %v69_v14, %v67_v13  ;;  %v43_v19 = vsel %vm42_vm0, %v41_v17, %v40_v16 }
  0x10   :  { %72 = vrot.lane.b32.xlu1 %v71_v15, %s93_s22  ;;  %45 = vst.msk [vmem:[%s147_s1] sm:$0xff] %vm44_vm1, %v43_v19  }
  0x13   :  { %62 = vrot.lane.b32.xlu0 %v61_v18, %s94_s25 }
  0x81   :  { %v53_v20 = vpop.permute.xlu0 %52  }
  0x82   :  { %55 = vst.msk [vmem:[%s147_s1] sm:$0xff] %vm54_vm2, %v53_v20   ;;  %v73_v21 = vpop.permute.xlu1 %72  }
  0x85   :  { %v63_v22 = vpop.permute.xlu0 %62  }
  0x86   :  { %65 = vst.msk [vmem:[%s147_s1] sm:$0xff] %vm64_vm3, %v63_v22  }
  0x87   :  { %75 = vst.msk [vmem:[%s147_s1] sm:$0xff] %vm74_vm4, %v73_v21  }

// kernel: llama_forward.1
= control target key start
LH: loop header
LB: loop body
LE: loop exit
PB: predicated region body
PF: predicated region fallthrough
CT: control target
= control target key end

     0   :  { %s3116_s0 = inlined_call_operand.vmem [shape: s32[2,8,1], index: 0, kind: input, shape index: {}]   ;;  %s3117_s1 = inlined_call_operand.vmem [shape: f32[2,8,32], index: 1, kind: input, shape index: {}]   ;;  %s3118_s2 = inlined_call_operand.vmem [shape: f32[8,256], index: 2, kind: input, shape index: {}]   ;;  %s3119_s3 = inlined_call_operand.vmem [shape: f32[8,256], index: 3, kind: input, shape index: {}]   ;;  %s3120_s4 = inlined_call_operand.vmem [shape: bf16[32,32], index: 4, kind: input, shape index: {}]   ;;  %s3121_s5 = inlined_call_operand.vmem [shape: bf16[64,32], index: 5, kind: input, shape index: {}]   ;;  %s3122_s6 = inlined_call_operand.vmem [shape: bf16[2,1,32], index: 6, kind: input, shape index: {}]   ;;  %s3123_s7 = inlined_call_operand.vmem [shape: bf16[2,1,32], index: 7, kind: input, shape index: {}]   ;;  %s3124_s8 = inlined_call_operand.vmem [shape: bf16[1,32], index: 8, kind: input, shape index: {}]   ;;  %s3125_s9 = inlined_call_operand.vmem [shape: bf16[2,32,640], index: 9, kind: input, shape index: {}]   ;;  %s3126_s10 = inlined_call_operand.vmem [shape: bf16[2,32,32], index: 10, kind: input, shape index: {}]   ;;  %s3127_s11 = inlined_call_operand.vmem [shape: bf16[2,32,256], index: 11, kind: input, shape index: {}]   ;;  %s3128_s12 = inlined_call_operand.vmem [shape: bf16[2,128,32], index: 12, kind: input, shape index: {}]   ;;  %s3129_s13 = inlined_call_operand.vmem [shape: bf16[32,128], index: 13, kind: input, shape index: {}]   ;;  %s3130_s14 = inlined_call_operand.hbm [shape: f32[2,8,128], index: 14, kind: output, shape index: {}]  }
   0x1   :  { %3133 = sst [smem:[#allocation7_spill]] %s3116_s0 }
   0x2   :  { %3134 = sst [smem:[#allocation8_spill]] %s3117_s1 }
   0x3   :  { %19 = vsyncpa [#allocation3], 0 }
   0x4   :  { %21 = vsyncpa [#allocation3 + $0x1], 0  ;;  %s2642_s29 = smov 0   ;;  %s2644_s30 = smov 0  }
   0x5   :  { %s2646_s15 = smov 0   ;;  %s2648_s16 = smov 0  }
   0x6 LB: > { %3135 = sst [smem:[#allocation5_spill]] %s2557_s15  ;;  %s2663_s17 = sadd.s32 4294967295, %s2561_s16   ;;  %s2561_s16 = sphi %s2648_s16, %s3146_s16   ;;  %s2557_s15 = sphi %s2646_s15, %s3143_s15   ;;  %s2553_s30 = sphi %s2644_s30, %s3145_s30   ;;  %s2549_s29 = sphi %s2642_s29, %s3144_s29  }
   0x7   : > { %s2040_s18 = sadd.s32 4294967294, %s2561_s16   ;;  %s2667_s19 = sadd.s32 1, %s2561_s16  }
   0x8   : > { %s338_s20 = sadd.s32 1, %s2557_s15  ;;  %s335_s21 = ssub.s32 %s2561_s16, %s2667_s19 }
   0x9   : > { %p348_p0 = scmp.ne.s32.totalorder %s2557_s15, %s2553_s30  ;;  %p336_p1 = scmp.eq.s32.totalorder %s335_s21, 0 }
   0xa   : > { %p349_p2 = scmp.eq.s32.totalorder %s2663_s17, 1  ;;  %p354_p3 = scmp.ne.s32.totalorder %s2553_s30, %s2549_s29 }
   0xb   : > { %p355_p4 = scmp.eq.s32.totalorder %s2040_s18, 1  ;;  %p2043_p7 = scmp.ge.s32.totalorder %s2561_s16, 1 }
   0xc   : > { %s2678_s22 = scalar_select %p336_p1, %s2557_s15, %s338_s20  }
   0xd   : > { %p2680_p5 = por %p349_p2, %p348_p0  ;;  %p2684_p6 = por %p355_p4, %p354_p3 }
   0xe   : > { %3136 = sst [smem:[#allocation6_spill]] %s2678_s22  ;;  %p423_p8 = scmp.lt.s32.totalorder %s2561_s16, 3 }
  0x10   : > { %p424_p9 = pnand %p2043_p7, %p423_p8 }
  0x11   : > { %p472_p10 = scmp.lt.s32.totalorder (!%p424_p9), %s2663_s17, 1  ;;  %v2405_v0 = vld [vmem:[%s3121_s5] sm:$0xff] (!%p424_p9)   ;;  %v2563_v1 = vmov (!%p424_p9), 0   ;;  %v2564_v2 = vmov (!%p424_p9), 0.0   ;;  %v2406_v3 = vld [vmem:[%s3121_s5 + $0x8] sm:$0xff] (!%p424_p9)   ;;  %s3139_s0 = sld [smem:[#allocation7_spill]] (!%p424_p9)  ;;  %v482_v7 = vlaneseq (!%p424_p9) }
  0x12   : > { %427 = sbr.rel (%p424_p9) target bundleno = 4512 (0x11a0), region = 76  ;;  %2404 = vset.pattern.permute.xlu0 (!%p424_p9), %v2563_v1  ;;  %2222 = vmatprep.subr.bf16.mxu1 (!%p424_p9), %v2564_v2  ;;  %v2407_v5 = vld [vmem:[%s3121_s5 + $0x10] sm:$0xff] (!%p424_p9)   ;;  %v2408_v6 = vld [vmem:[%s3121_s5 + $0x18] sm:$0xff] (!%p424_p9)   ;;  %vm2565_vm0 = vmmov (!%p424_p9), 0   ;;  %vm523_vm2 = vcmask (!%p424_p9), 523264   ;;  %vm580_vm3 = vcmask (!%p424_p9), 261120  }
  0x13   : > { %2223 = vmatpush3.bf16.msra.mxu1 (!%p424_p9), %v2405_v0  ;;  %2234 = vmatprep.subr.bf16.mxu0 (!%p424_p9), %v2564_v2  ;;  %v483_v8 = vand.u32 (!%p424_p9), 127, %v482_v7  ;;  %v2411_v20 = vld [vmem:[%s3125_s9 + $0x4] ss:$20 sps:$4 sm:$0xff] (!%p424_p9)   ;;  %v2409_v21 = vld [vmem:[%s3125_s9] ss:$20 sps:$4 sm:$0xff] (!%p424_p9)   ;;  %v594_v30 = vshrl.u32 (!%p424_p9), %v482_v7, 7 }
  0x14   : > { %2224 = vmatprep.subr.bf16.mxu1 (!%p424_p9), %v2564_v2  ;;  %2230 = vmatprep.mubr.msk.bf16.mxu1 (!%p424_p9), %vm2565_vm0, %v2564_v2  ;;  %v2412_v22 = vld [vmem:[%s3125_s9 + $0x10] ss:$20 sps:$4 sm:$0xff] (!%p424_p9)   ;;  %v2415_v23 = vld [vmem:[%s3125_s9 + $0x2c] ss:$20 sps:$4 sm:$0xff] (!%p424_p9)   ;;  %v2413_v24 = vld [vmem:[%s3125_s9 + $0x28] ss:$20 sps:$4 sm:$0xff] (!%p424_p9)  }
  0x15   : > { %2238 = vmatprep.mubr.msk.bf16.mxu0 (!%p424_p9), %vm2565_vm0, %v2564_v2  ;;  %2235 = vmatpush3.bf16.msra.mxu0 (!%p424_p9), %v2412_v22  ;;  %v2416_v25 = vld [vmem:[%s3125_s9 + $0x38] ss:$20 sps:$4 sm:$0xff] (!%p424_p9)   ;;  %v577_v31 = vld [vmem:[%s3122_s6] sm:$0x1] (!%p424_p9)  ;;  %v2754_v32 = vsub.s32 (!%p424_p9), 0, %v594_v30  ;;  %vm798_vm4 = vcmask (!%p424_p9), 1043456  }
  0x16   : > { %2236 = vmatprep.subr.bf16.mxu0 (!%p424_p9), %v2564_v2  ;;  %v2419_v26 = vld [vmem:[%s3125_s9 + $0xc] ss:$20 sps:$4 sm:$0xff] (!%p424_p9)   ;;  %v591_v33 = vpack.i.b16 (!%p424_p9), %v577_v31, %v577_v31  ;;  %v2417_v38 = vld [vmem:[%s3125_s9 + $0x8] ss:$20 sps:$4 sm:$0xff] (!%p424_p9)   ;;  %v2420_v41 = vld [vmem:[%s3125_s9 + $0x30] ss:$20 sps:$4 sm:$0xff] (!%p424_p9)  }
  0x17   : > { %2225 = vmatpush3.bf16.msra.mxu1 (!%p424_p9), %v2406_v3  ;;  %v2422_v40 = vld [vmem:[%s3125_s9 + $0x34] ss:$20 sps:$4 sm:$0xff] (!%p424_p9)   ;;  %v2790_v56 = vld [vmem:[%s3118_s2] sm:$0xff] (!%p424_p9)  ;;  %s3141_s1 = sld [smem:[#allocation8_spill]] (!%p424_p9)  ;;  %s469_s15 = sand.u32 (!%p424_p9), 1, %s2553_s30  }
  0x18   : > { %2226 = vmatprep.subr.bf16.mxu1 (!%p424_p9), %v2564_v2  ;;  %v596_v36 = vrot.slane (!%p424_p9), %v591_v33, %v2754_v32  ;;  %v2778_v42 = vld [vmem:[%s3119_s3 + $0x8] sm:$0xff] (!%p424_p9)  ;;  %v2795_v57 = vld [vmem:[%s3120_s4] sm:$0xff] (!%p424_p9)   ;;  %s2163_s25 = sshll.u32 (!%p424_p9), %s2663_s17, 7 }
  0x19   : > { %s2697_s27 = scalar_select %p472_p10, %s2663_s17, 1  ;;  %2237 = vmatpush3.bf16.msra.mxu0 %v2416_v25  ;;  %v2783_v43 = vld [vmem:[%s3118_s2 + $0x8] sm:$0xff]  ;;  %v2800_v58 = vld [vmem:[%s3119_s3] sm:$0xff] }
  0x1a   : > { %2250 = vmatprep.subr.bf16.mxu0 %v2564_v2  ;;  %v2425_v30 = vld [vmem:[%s3126_s10] sm:$0xff]   ;;  %v2426_v31 = vld [vmem:[%s3126_s10 + $0x8] sm:$0xff]   ;;  %s2566_s17 = smov [#allocation2]  }
  0x1b   : > { %s3132_s20 = sshll.u32 %s2697_s27, 3  ;;  %2227 = vmatpush3.bf16.msra.mxu1 %v2407_v5  ;;  %s3140_s28 = sshll.u32 %s2697_s27, 3 }
  0x1c   : > { %s475_s26 = scalar_lea.vmem %s3139_s0, %s3132_s20  ;;  %2228 = vmatprep.subr.bf16.mxu1 %v2564_v2  ;;  %s3076_s20 = scalar_lea.hbm %s3130_s14, %s2163_s25 }
  0x1d   : > { %v481_v4 = vld [vmem:[%s475_s26] sm:$0xff]  ;;  %s479_s22 = scalar_lea.vmem %s3141_s1, %s3140_s28  ;;  %s1956_s28 = scalar_lea.sflag [#allocation3], %s469_s15 }
  0x1e   : > { %485 = vperm.xlu0 %2404, %v481_v4  }
  0x1f   : > { %2229 = vmatpush3.bf16.msra.mxu1 %v2408_v6 }
  0x20   : > { %665 = vmatprep.subr.bf16.mxu1 %v2411_v20 }
  0x9d   : > { %v486_v9 = vpop.permute.xlu0 %485 }
  0x9e   : > { %vm487_vm1 = vcmp.eq.s32.totalorder %v486_v9, %v483_v8  ;;  %v2809_v9 = vld [vmem:[%s3120_s4 + $0x8] sm:$0xff]  }
  0x9f   : > { %v2047_v10 = vsel %vm487_vm1, 1.0, %v2564_v2 }
  0xa0   : > { %v490_v11 = vpack.c.bf16 %v2047_v10, %v2047_v10 }
  0xa2   : > { %2231 = vmatmul.mubr.msk.bf16.vlgmr.msra.gmra.mrb[0].mxu1 %vm523_vm2, %v490_v11 }
  0xa3   : > { %697 = vmatprep.mubr.bf16.mxu1 %v2563_v1  ;;  %666 = vmatpush1.bf16.msra.mxu1 %v2409_v21 }
  0xa4   : > { %667 = vmatprep.subr.bf16.mxu1 %v2415_v23 }
  0xa7   : > { %668 = vmatpush1.bf16.msra.mxu1 %v2413_v24 }
  0xa8   : > { %706 = vmatprep.subr.bf16.mxu1 %v2419_v26 }
 0x175   : > { %v561_v12 = vpop.f32.mrb[0].mxu1 }
 0x176   : > { %v2724_v13 = vpack.c.bf16 %v561_v12, %v561_v12  ;;  %v2232_v14 = vpop.f32.mrb[1].mxu1 }
 0x177   : > { %v564_v15 = vpop.f32.mrb[2].mxu1 }
 0x178   : > { %v578_v16 = vunpack.c.l.bf16 %v2724_v13  ;;  %v2233_v17 = vpop.f32.mrb[3].mxu1 }
 0x17a   : > { %v579_v18 = vmul.f32 %v578_v16, %v578_v16 }
 0x17c   : > { %v581_v19 = vsel %vm580_vm3, %v579_v18, 0.0  ;;  %v2829_v18 = vld [vmem:[%s479_s22] sm:$0xff]  ;;  %s2044_s22 = sshll.u32 %s469_s15, 3 }
 0x17d   : > { %582 = vadd.xlane.f32.xlu0 %v581_v19  ;;  %s471_s27 = scalar_lea.vmem [#allocation2], %s2044_s22  ;;  %s2503_s22 = sshll.u32 %s2566_s17, 4  ;;  %s2504_s22 = int_to_ptr.vmem [resolvable:$false] %s2503_s22 }
 0x17e   : > { %s1969_s21 = sshll.u32 %s471_s27, 4  ;;  %s2505_s1 = scalar_lea.vmem %s2504_s22, 256  ;;  %s3071_s21 = int_to_ptr.vmem [resolvable:$true] %s1969_s21 }
 0x17f   : > { %s2499_s18 = scalar_lea.vmem %s3071_s21, 128  ;;  %p2506_p0 = scmp.lt.s32.totalorder %s3071_s21, %s2504_s22 }
 0x180   : > { %p2500_p11 = scmp.ne.s32.totalorder %s3071_s21, %s2499_s18  ;;  %p2507_p1 = scmp.lt.s32.totalorder %s2505_s1, %s2499_s18 }
 0x182   : > { %p2501_p12 = pnand %p2500_p11, %p2680_p5  ;;  %p2508_p2 = por %p2507_p1, %p2506_p0 }
 0x184   : > { %p2502_p13 = pneg %p2501_p12 }
 0x186   : > { %p2509_p3 = pnand %p2508_p2, %p2502_p13 }
 0x20a   : > { %v583_v27 = vpop.xlane.xlu0 %582 }
 0x20b   : > { %v585_v28 = vmul.f32 0.03125, %v583_v27 }
 0x20d   : > { %v586_v29 = vadd.f32 1e-05, %v585_v28 }
 0x20f   : > { %2473 = vrsqrt.f32 %v586_v29 }
 0x219   : > { %v2474_v34 = vpop.eup %2473 }
 0x21a   : > { %v588_v35 = vmul.f32 %v2474_v34, %v578_v16 }
 0x21c   : > { %v589_v37 = vpack.c.bf16 %v588_v35, %v588_v35 }
 0x21e   : > { %v597_v39 = vmul.bf16 %v596_v36, %v589_v37 }
 0x220   : > { %2063 = vmatmul.mubr.msk.bf16.vlgmr.msra.gmra.mrb[4].mxu1 %vm580_vm3, %v597_v39  ;;  %2239 = vmatmul.mubr.msk.bf16.vlgmr.msra.gmra.mrb[0].mxu0 %vm580_vm3, %v597_v39 }
 0x221   : > { %707 = vmatpush1.bf16.msra.mxu1 %v2417_v38  ;;  %738 = vmatprep.mubr.bf16.mxu1 %v2563_v1 }
 0x222   : > { %708 = vmatprep.subr.bf16.mxu1 %v2422_v40  ;;  %2254 = vmatprep.mubr.msk.bf16.mxu0 %vm2565_vm0, %v2564_v2 }
 0x225   : > { %709 = vmatpush1.bf16.msra.mxu1 %v2420_v41 }
 0x226   : > { %2242 = vmatprep.subr.bf16.mxu1 %v2564_v2 }
 0x228   : > { %2064 = vmatmul.mubr.msk.bf16.vlgmr.msra.gmra.mrb[8].mxu1 %vm580_vm3, %v597_v39 }
 0x229   : > { %2246 = vmatprep.mubr.msk.bf16.mxu1 %vm2565_vm0, %v2564_v2 }
 0x2f3   : > { %v699_v44 = vpop.f32.mrb[4].mxu1  ;;  %v781_v45 = vpop.f32.mrb[0].mxu0 }
 0x2f4   : > { %v790_v46 = vmul.f32 %v781_v45, %v2778_v42  ;;  %v701_v47 = vpop.f32.mrb[5].mxu1  ;;  %v2240_v48 = vpop.f32.mrb[1].mxu0  ;;  %v787_v63 = vmul.f32 %v699_v44, %v2790_v56 }
 0x2f5   : > { %v788_v49 = vmul.f32 %v701_v47, %v2783_v43  ;;  %v703_v50 = vpop.f32.mrb[6].mxu1  ;;  %v784_v51 = vpop.f32.mrb[2].mxu0 }
 0x2f6   : > { %v704_v52 = vpop.f32.mrb[7].mxu1  ;;  %v2241_v53 = vpop.f32.mrb[3].mxu0 }
 0x2f7   : > { %v792_v54 = vadd.f32 %v790_v46, %v788_v49 }
 0x2f9   : > { %v794_v55 = vpack.c.bf16 %v792_v54, %v792_v54 }
 0x2fb   : > { %v797_v59 = vrot.slane %v794_v55, 4  ;;  %v740_v60 = vpop.f32.mrb[8].mxu1 }
 0x2fc   : > { %v795_v61 = vpack.c.bf16 %v740_v60, %v740_v60  ;;  %v742_v62 = vpop.f32.mrb[9].mxu1  ;;  %v2427_v60 = vld [vmem:[%s3127_s11] ss:$8 sps:$4 sm:$0xff]  }
 0x2fd   : > { %v789_v0 = vmul.f32 %v742_v62, %v2800_v58  ;;  %v744_v3 = vpop.f32.mrb[10].mxu1  ;;  %v801_v4 = vsel %vm798_vm4, %v794_v55, %v797_v59  ;;  %v2429_v59 = vld [vmem:[%s3127_s11 + $0x4] ss:$8 sps:$4 sm:$0xff]  }
 0x2fe   : > { %v874_v5 = vrot.slane %v795_v61, 4  ;;  %v745_v6 = vpop.f32.mrb[11].mxu1  ;;  %v815_v7 = vmul.bf16 %v2795_v57, %v801_v4  ;;  %v816_v14 = vmul.bf16 %v2809_v9, %v801_v4  ;;  %v1029_v3 = vld [vmem:[%s3123_s7] sm:$0x1] }
 0x2ff   : > { %v791_v8 = vadd.f32 %v789_v0, %v787_v63  ;;  %v1041_v4 = vpack.i.b16 %v1029_v3, %v1029_v3  ;;  %v2454_v3 = vld [vmem:[%s3125_s9 + $0x88] ss:$20 sps:$4 sm:$0xff]  }
 0x300   : > { %v877_v10 = vsel %vm798_vm4, %v795_v61, %v874_v5  ;;  %v821_v11 = vsel %vm580_vm3, %v815_v7, 0  ;;  %v824_v16 = vsel %vm580_vm3, %v816_v14, 0  ;;  %v2430_v61 = vld [vmem:[%s3127_s11 + $0x10] ss:$8 sps:$4 sm:$0xff]  }
 0x301   : > { %v879_v12 = vmul.bf16 %v2795_v57, %v877_v10  ;;  %2243 = vmatpush3.bf16.xpose.msra.mxu1 %v821_v11  ;;  %v880_v15 = vmul.bf16 %v2809_v9, %v877_v10  ;;  %v793_v17 = vpack.c.bf16 %v791_v8, %v791_v8  ;;  %v1046_v7 = vrot.slane %v1041_v4, %v2754_v32  ;;  %v2433_v11 = vld [vmem:[%s3128_s12] sm:$0xff]   ;;  %v2435_v14 = vld [vmem:[%s3128_s12 + $0x10] sm:$0xff]  }
 0x302   : > { %2244 = vmatprep.subr.bf16.mxu1 %v2564_v2 }
 0x303   : > { %2251 = vmatpush3.bf16.msra.mxu0 %v879_v12  ;;  %v2434_v12 = vld [vmem:[%s3128_s12 + $0x8] sm:$0xff]  }
 0x304   : > { %2252 = vmatprep.subr.bf16.mxu0 %v2564_v2 }
 0x307   : > { %2253 = vmatpush3.bf16.msra.mxu0 %v880_v15  ;;  %v2436_v15 = vld [vmem:[%s3128_s12 + $0x18] sm:$0xff]  }
 0x308   : > { %2258 = vmatprep.subr.bf16.mxu0 %v2564_v2 }
 0x309   : > { %2245 = vmatpush3.bf16.xpose.msra.mxu1 %v824_v16  ;;  %v2437_v16 = vld [vmem:[%s3128_s12 + $0x20] sm:$0xff]  }
 0x30a   : > { %2266 = vmatprep.subr.bf16.mxu1 %v2564_v2 }
 0x310   : > { %2247 = vmatmul.mubr.msk.bf16.vlgmr.msra.gmra.mrb[12].mxu1 %vm580_vm3, %v793_v17  ;;  %v2438_v17 = vld [vmem:[%s3128_s12 + $0x28] sm:$0xff]  }
 0x311   : > { %2270 = vmatprep.mubr.msk.bf16.mxu1 %vm2565_vm0, %v2564_v2  ;;  %2267 = vmatpush3.bf16.msra.mxu1 %v2425_v30 }
 0x312   : > { %2268 = vmatprep.subr.bf16.mxu1 %v2564_v2 }
 0x315   : > { %2269 = vmatpush3.bf16.msra.mxu1 %v2426_v31 }
 0x316   : > { %2274 = vmatprep.subr.bf16.mxu1 %v2564_v2 }
 0x3e3   : > { %v860_v19 = vpop.f32.mrb[12].mxu1 }
 0x3e4   : > { %v861_v20 = vadd.f32 %v860_v19, %v2829_v18  ;;  %v2248_v21 = vpop.f32.mrb[13].mxu1  ;;  %v2439_v19 = vld [vmem:[%s3128_s12 + $0x30] sm:$0xff]  }
 0x3e5   : > { %v863_v22 = vpop.f32.mrb[14].mxu1 }
 0x3e6   : > { %v2249_v23 = vpop.f32.mrb[15].mxu1  ;;  %v866_v24 = vsel %vm580_vm3, %v861_v20, -inf }
 0x3e7   : > { %867 = vmax.xlane.f32.xlu1 %v866_v24 }
 0x474   : > { %v868_v25 = vpop.xlane.xlu1 %867 }
 0x475   : > { %v869_v26 = vsub.f32 %v861_v20, %v868_v25  ;;  %v2440_v20 = vld [vmem:[%s3128_s12 + $0x38] sm:$0xff]  }
 0x477   : > { %v870_v27 = vmul.f32 1.442695, %v869_v26 }
 0x479   : > { %2475 = vpow2.f32 %v870_v27 }
 0x483   : > { %v2476_v28 = vpop.eup %2475 }
 0x484   : > { %v872_v29 = vpack.c.bf16 %v2476_v28, %v2476_v28 }
 0x486   : > { %2255 = vmatmul.mubr.msk.bf16.vlgmr.msra.gmra.mrb[4].mxu0 %vm580_vm3, %v872_v29 }
 0x487   : > { %2259 = vmatpush3.bf16.msra.mxu0 %v2795_v57  ;;  %2262 = vmatprep.mubr.msk.bf16.mxu0 %vm2565_vm0, %v2564_v2 }
 0x488   : > { %2260 = vmatprep.subr.bf16.mxu0 %v2564_v2 }
 0x48b   : > { %2261 = vmatpush3.bf16.msra.mxu0 %v2809_v9 }
 0x48c   : > { %1075 = vmatprep.subr.bf16.mxu0 %v2429_v59 }
 0x48e   : > { %2263 = vmatmul.mubr.msk.bf16.vlgmr.msra.gmra.mrb[8].mxu0 %vm580_vm3, %v872_v29 }
 0x48f   : > { %1107 = vmatprep.mubr.bf16.mxu0 %v2563_v1  ;;  %1076 = vmatpush1.bf16.msra.mxu0 %v2427_v60 }
 0x559   : > { %v918_v33 = vpop.f32.mrb[4].mxu0 }
 0x55a   : > { %v2256_v34 = vpop.f32.mrb[5].mxu0 }
 0x55b   : > { %v921_v35 = vpop.f32.mrb[6].mxu0 }
 0x55c   : > { %v2257_v36 = vpop.f32.mrb[7].mxu0 }
 0x561   : > { %v958_v37 = vpop.f32.mrb[8].mxu0 }
 0x562   : > { %v964_v38 = vmax.f32 %v958_v37, 1e-20  ;;  %v2264_v39 = vpop.f32.mrb[9].mxu0 }
 0x563   : > { %v961_v40 = vpop.f32.mrb[10].mxu0 }
 0x564   : > { %2477 = vrcp.f32 %v964_v38  ;;  %v2265_v41 = vpop.f32.mrb[11].mxu0 }
 0x56e   : > { %v2478_v44 = vpop.eup %2477 }
 0x56f   : > { %v966_v45 = vmul.f32 %v2478_v44, %v918_v33  ;;  %v2443_v44 = vld [vmem:[%s3125_s9 + $0x54] ss:$20 sps:$4 sm:$0xff]  }
 0x571   : > { %v967_v46 = vpack.c.bf16 %v966_v45, %v966_v45  ;;  %v2441_v45 = vld [vmem:[%s3125_s9 + $0x50] ss:$20 sps:$4 sm:$0xff]  }
 0x573   : > { %2271 = vmatmul.mubr.msk.bf16.vlgmr.msra.gmra.mrb[16].mxu1 %vm580_vm3, %v967_v46  ;;  %v2446_v46 = vld [vmem:[%s3125_s9 + $0x7c] ss:$20 sps:$4 sm:$0xff]  }
 0x574   : > { %2290 = vmatprep.mubr.msk.bf16.mxu1 %vm2565_vm0, %v2564_v2  ;;  %2275 = vmatpush3.bf16.msra.mxu1 %v2433_v11 }
 0x575   : > { %2276 = vmatprep.subr.bf16.mxu1 %v2564_v2 }
 0x578   : > { %2277 = vmatpush3.bf16.msra.mxu1 %v2434_v12 }
 0x579   : > { %2278 = vmatprep.subr.bf16.mxu1 %v2564_v2 }
 0x57c   : > { %2279 = vmatpush3.bf16.msra.mxu1 %v2435_v14 }
 0x57d   : > { %2280 = vmatprep.subr.bf16.mxu1 %v2564_v2 }
 0x580   : > { %2281 = vmatpush3.bf16.msra.mxu1 %v2436_v15 }
 0x581   : > { %2282 = vmatprep.subr.bf16.mxu1 %v2564_v2 }
 0x584   : > { %2283 = vmatpush3.bf16.msra.mxu1 %v2437_v16 }
 0x585   : > { %2284 = vmatprep.subr.bf16.mxu1 %v2564_v2 }
 0x588   : > { %2285 = vmatpush3.bf16.msra.mxu1 %v2438_v17 }
 0x589   : > { %2286 = vmatprep.subr.bf16.mxu1 %v2564_v2 }
 0x58c   : > { %2287 = vmatpush3.bf16.msra.mxu1 %v2439_v19 }
 0x58d   : > { %2288 = vmatprep.subr.bf16.mxu1 %v2564_v2 }
 0x590   : > { %2289 = vmatpush3.bf16.msra.mxu1 %v2440_v20 }
 0x591   : > { %2310 = vmatprep.subr.bf16.mxu1 %v2564_v2 }
 0x646   : > { %v1021_v47 = vpop.f32.mrb[16].mxu1 }
 0x647   : > { %v1027_v48 = vpack.c.bf16 %v1021_v47, %v1021_v47  ;;  %v2272_v49 = vpop.f32.mrb[17].mxu1  ;;  %v2444_v47 = vld [vmem:[%s3125_s9 + $0x78] ss:$20 sps:$4 sm:$0xff]  }
 0x648   : > { %v1024_v50 = vpop.f32.mrb[18].mxu1 }
 0x649   : > { %v2853_v51 = vadd.bf16 %v1027_v48, %v2724_v13  ;;  %v2273_v52 = vpop.f32.mrb[19].mxu1  ;;  %v2432_v13 = vld [vmem:[%s3127_s11 + $0x14] ss:$8 sps:$4 sm:$0xff]  }
 0x64a   : > { %1077 = vmatprep.subr.bf16.mxu0 %v2432_v13  ;;  %v2449_v48 = vld [vmem:[%s3125_s9 + $0x5c] ss:$20 sps:$4 sm:$0xff]   ;;  %v2088_v52 = vld [vmem:[%s3122_s6 + $0x1] sm:$0x1]  ;;  %v2447_v13 = vld [vmem:[%s3125_s9 + $0x58] ss:$20 sps:$4 sm:$0xff]  }
 0x64b   : > { %v1030_v53 = vunpack.c.l.bf16 %v2853_v51  ;;  %1078 = vmatpush1.bf16.msra.mxu0 %v2430_v61 }
 0x64c   : > { %1319 = vmatprep.subr.bf16.mxu0 %v2443_v44 }
 0x64d   : > { %v1031_v54 = vmul.f32 %v1030_v53, %v1030_v53 }
 0x64f   : > { %v1032_v55 = vsel %vm580_vm3, %v1031_v54, 0.0 }
 0x650   : > { %1033 = vadd.xlane.f32.xlu1 %v1032_v55 }
 0x6dd   : > { %v1034_v62 = vpop.xlane.xlu1 %1033 }
 0x6de   : > { %v1035_v63 = vmul.f32 0.03125, %v1034_v62  ;;  %v2452_v62 = vld [vmem:[%s3125_s9 + $0x84] ss:$20 sps:$4 sm:$0xff]  }
 0x6e0   : > { %v1036_v0 = vadd.f32 1e-05, %v1035_v63  ;;  %v2450_v63 = vld [vmem:[%s3125_s9 + $0x80] ss:$20 sps:$4 sm:$0xff]  }
 0x6e2   : > { %2479 = vrsqrt.f32 %v1036_v0  ;;  %v2453_v0 = vld [vmem:[%s3125_s9 + $0x60] ss:$20 sps:$4 sm:$0xff]  }
 0x6ec   : > { %v2480_v5 = vpop.eup %2479 }
 0x6ed   : > { %v1038_v6 = vmul.f32 %v2480_v5, %v1030_v53  ;;  %v1244_v53 = vpack.i.b16 %v2088_v52, %v2088_v52 }
 0x6ef   : > { %v1039_v8 = vpack.c.bf16 %v1038_v6, %v1038_v6  ;;  %v1249_v59 = vrot.slane %v1244_v53, %v2754_v32 }
 0x6f1   : > { %v1047_v10 = vmul.bf16 %v1046_v7, %v1039_v8 }
 0x6f3   : > { %2078 = vmatmul.mubr.msk.bf16.vlgmr.msra.gmra.mrb[12].mxu0 %vm580_vm3, %v1047_v10 }
 0x6f4   : > { %1351 = vmatprep.mubr.bf16.mxu0 %v2563_v1  ;;  %1320 = vmatpush1.bf16.msra.mxu0 %v2441_v45 }
 0x6f5   : > { %1321 = vmatprep.subr.bf16.mxu0 %v2446_v46 }
 0x6f8   : > { %1322 = vmatpush1.bf16.msra.mxu0 %v2444_v47 }
 0x6f9   : > { %1360 = vmatprep.subr.bf16.mxu0 %v2449_v48 }
 0x7c6   : > { %v1109_v21 = vpop.f32.mrb[12].mxu0 }
 0x7c7   : > { %v2079_v22 = vmul.f32 -1.442695, %v1109_v21  ;;  %v1111_v23 = vpop.f32.mrb[13].mxu0 }
 0x7c8   : > { %v1113_v24 = vpop.f32.mrb[14].mxu0 }
 0x7c9   : > { %2481 = vpow2.f32 %v2079_v22  ;;  %v1114_v25 = vpop.f32.mrb[15].mxu0 }
 0x7d3   : > { %v2482_v26 = vpop.eup %2481 }
 0x7d4   : > { %v1119_v27 = vadd.f32 1.0, %v2482_v26 }
 0x7d6   : > { %2483 = vrcp.f32 %v1119_v27 }
 0x7e0   : > { %v2484_v28 = vpop.eup %2483 }
 0x7e1   : > { %v1122_v29 = vmul.f32 %v2484_v28, %v1109_v21 }
 0x7e3   : > { %v1123_v30 = vmul.f32 %v1122_v29, %v1111_v23 }
 0x7e5   : > { %v1124_v31 = vpack.c.bf16 %v1123_v30, %v1123_v30 }
 0x7e7   : > { %2291 = vmatmul.mubr.bf16.vlgmr.msra.gmra.mrb[20].mxu1 %v1124_v31 }
 0x7e8   : > { %2314 = vmatprep.mubr.msk.bf16.mxu1 %vm2565_vm0, %v2564_v2 }
 0x8ba   : > { %v1223_v33 = vpop.f32.mrb[20].mxu1 }
 0x8bb   : > { %v1229_v34 = vpack.c.bf16 %v1223_v33, %v1223_v33  ;;  %v2292_v35 = vpop.f32.mrb[21].mxu1 }
 0x8bc   : > { %v1226_v36 = vpop.f32.mrb[22].mxu1 }
 0x8bd   : > { %v2910_v37 = vadd.bf16 %v1229_v34, %v2853_v51  ;;  %v2293_v38 = vpop.f32.mrb[23].mxu1 }
 0x8bf   : > { %v1233_v39 = vunpack.c.l.bf16 %v2910_v37 }
 0x8c1   : > { %v1234_v40 = vmul.f32 %v1233_v39, %v1233_v39 }
 0x8c3   : > { %v1235_v41 = vsel %vm580_vm3, %v1234_v40, 0.0 }
 0x8c4   : > { %1236 = vadd.xlane.f32.xlu1 %v1235_v41 }
 0x951   : > { %v1237_v49 = vpop.xlane.xlu1 %1236 }
 0x952   : > { %v1238_v50 = vmul.f32 0.03125, %v1237_v49 }
 0x954   : > { %v1239_v51 = vadd.f32 1e-05, %v1238_v50 }
 0x956   : > { %2485 = vrsqrt.f32 %v1239_v51 }
 0x960   : > { %v2486_v54 = vpop.eup %2485 }
 0x961   : > { %v1241_v55 = vmul.f32 %v2486_v54, %v1233_v39 }
 0x963   : > { %v1242_v60 = vpack.c.bf16 %v1241_v55, %v1241_v55 }
 0x965   : > { %v1250_v61 = vmul.bf16 %v1249_v59, %v1242_v60 }
 0x967   : > { %2111 = vmatmul.mubr.msk.bf16.vlgmr.msra.gmra.mrb[16].mxu0 %vm580_vm3, %v1250_v61 }
 0x968   : > { %1361 = vmatpush1.bf16.msra.mxu0 %v2447_v13  ;;  %1392 = vmatprep.mubr.bf16.mxu0 %v2563_v1 }
 0x969   : > { %1362 = vmatprep.subr.bf16.mxu0 %v2452_v62 }
 0x96c   : > { %1363 = vmatpush1.bf16.msra.mxu0 %v2450_v63 }
 0x96d   : > { %2294 = vmatprep.subr.bf16.mxu0 %v2564_v2 }
 0x96f   : > { %2112 = vmatmul.mubr.msk.bf16.vlgmr.msra.gmra.mrb[20].mxu0 %vm580_vm3, %v1250_v61 }
 0x970   : > { %2295 = vmatpush3.bf16.msra.mxu0 %v2453_v0  ;;  %2298 = vmatprep.mubr.msk.bf16.mxu0 %vm2565_vm0, %v2564_v2 }
 0x971   : > { %2296 = vmatprep.subr.bf16.mxu0 %v2564_v2 }
 0x974   : > { %2297 = vmatpush3.bf16.msra.mxu0 %v2454_v3 }
 0x975   : > { %2302 = vmatprep.subr.bf16.mxu0 %v2564_v2 }
 0x977   : > { %2299 = vmatmul.mubr.msk.bf16.vlgmr.msra.gmra.mrb[24].mxu0 %vm580_vm3, %v1250_v61 }
 0x978   : > { %2306 = vmatprep.mubr.msk.bf16.mxu0 %vm2565_vm0, %v2564_v2 }
 0xa3a   : > { %v1353_v4 = vpop.f32.mrb[16].mxu0 }
 0xa3b   : > { %v1355_v5 = vpop.f32.mrb[17].mxu0  ;;  %v1441_v12 = vmul.f32 %v1353_v4, %v2790_v56 }
 0xa3c   : > { %v1357_v6 = vpop.f32.mrb[18].mxu0  ;;  %v1442_v23 = vmul.f32 %v1355_v5, %v2783_v43 }
 0xa3d   : > { %v1358_v7 = vpop.f32.mrb[19].mxu0 }
 0xa42   : > { %v1394_v8 = vpop.f32.mrb[20].mxu0 }
 0xa43   : > { %v1449_v10 = vpack.c.bf16 %v1394_v8, %v1394_v8  ;;  %v1396_v11 = vpop.f32.mrb[21].mxu0  ;;  %v2459_v8 = vld [vmem:[%s3127_s11 + $0x24] ss:$8 sps:$4 sm:$0xff]  }
 0xa44   : > { %v1443_v14 = vmul.f32 %v1396_v11, %v2800_v58  ;;  %v1398_v15 = vpop.f32.mrb[22].mxu0  ;;  %v2460_v11 = vld [vmem:[%s3127_s11 + $0x30] ss:$8 sps:$4 sm:$0xff]  }
 0xa45   : > { %v1515_v16 = vrot.slane %v1449_v10, 4  ;;  %v1399_v17 = vpop.f32.mrb[23].mxu0 }
 0xa46   : > { %v1445_v19 = vadd.f32 %v1443_v14, %v1441_v12 }
 0xa47   : > { %v1518_v20 = vsel %vm798_vm4, %v1449_v10, %v1515_v16  ;;  %v2457_v10 = vld [vmem:[%s3127_s11 + $0x20] ss:$8 sps:$4 sm:$0xff]  }
 0xa48   : > { %v1520_v21 = vmul.bf16 %v2795_v57, %v1518_v20  ;;  %v1521_v56 = vmul.bf16 %v2809_v9, %v1518_v20  ;;  %v1447_v34 = vpack.c.bf16 %v1445_v19, %v1445_v19  ;;  %v2124_v16 = vld [vmem:[%s3123_s7 + $0x1] sm:$0x1] }
 0xa49   : > { %v1684_v17 = vpack.i.b16 %v2124_v16, %v2124_v16 }
 0xa4a   : > { %v1435_v22 = vpop.f32.mrb[24].mxu0  ;;  %2311 = vmatpush3.bf16.msra.mxu1 %v1520_v21 }
 0xa4b   : > { %v1444_v24 = vmul.f32 %v1435_v22, %v2778_v42  ;;  %v2300_v25 = vpop.f32.mrb[25].mxu0  ;;  %2312 = vmatprep.subr.bf16.mxu1 %v2564_v2  ;;  %v1689_v21 = vrot.slane %v1684_v17, %v2754_v32 }
 0xa4c   : > { %v1438_v58 = vpop.f32.mrb[26].mxu0  ;;  %v2464_v25 = vld [vmem:[%s3128_s12 + $0x48] sm:$0xff]  }
 0xa4d   : > { %v1446_v26 = vadd.f32 %v1444_v24, %v1442_v23  ;;  %v2301_v27 = vpop.f32.mrb[27].mxu0  ;;  %v2463_v24 = vld [vmem:[%s3128_s12 + $0x40] sm:$0xff]   ;;  %v2466_v58 = vld [vmem:[%s3128_s12 + $0x58] sm:$0xff]  }
 0xa4e   : > { %2313 = vmatpush3.bf16.msra.mxu1 %v1521_v56  ;;  %v2465_v56 = vld [vmem:[%s3128_s12 + $0x50] sm:$0xff]   ;;  %v2468_v27 = vld [vmem:[%s3128_s12 + $0x68] sm:$0xff]  }
 0xa4f   : > { %v1448_v28 = vpack.c.bf16 %v1446_v26, %v1446_v26  ;;  %2318 = vmatprep.subr.bf16.mxu1 %v2564_v2  ;;  %v2467_v26 = vld [vmem:[%s3128_s12 + $0x60] sm:$0xff]  }
 0xa51   : > { %v1451_v29 = vrot.slane %v1448_v28, 4 }
 0xa53   : > { %v1454_v30 = vsel %vm798_vm4, %v1448_v28, %v1451_v29  ;;  %v2469_v28 = vld [vmem:[%s3128_s12 + $0x70] sm:$0xff]   ;;  %v2470_v29 = vld [vmem:[%s3128_s12 + $0x78] sm:$0xff]  }
 0xa54   : > { %v1456_v31 = vmul.bf16 %v2795_v57, %v1454_v30  ;;  %v1457_v42 = vmul.bf16 %v2809_v9, %v1454_v30 }
 0xa56   : > { %v1462_v43 = vsel %vm580_vm3, %v1456_v31, 0  ;;  %v1465_v33 = vsel %vm580_vm3, %v1457_v42, 0 }
 0xa57   : > { %2303 = vmatpush3.bf16.xpose.msra.mxu0 %v1462_v43 }
 0xa58   : > { %2304 = vmatprep.subr.bf16.mxu0 %v2564_v2 }
 0xa5f   : > { %2305 = vmatpush3.bf16.xpose.msra.mxu0 %v1465_v33 }
 0xa60   : > { %2326 = vmatprep.subr.bf16.mxu0 %v2564_v2 }
 0xa66   : > { %2307 = vmatmul.mubr.msk.bf16.vlgmr.msra.gmra.mrb[28].mxu0 %vm580_vm3, %v1447_v34 }
 0xa67   : > { %2330 = vmatprep.mubr.msk.bf16.mxu0 %vm2565_vm0, %v2564_v2 }
 0xb39   : > { %v1501_v35 = vpop.f32.mrb[28].mxu0 }
 0xb3a   : > { %v1502_v36 = vadd.f32 %v1501_v35, %v2829_v18  ;;  %v2308_v38 = vpop.f32.mrb[29].mxu0  ;;  %v2455_v18 = vld [vmem:[%s3126_s10 + $0x10] sm:$0xff]  }
 0xb3b   : > { %v1504_v39 = vpop.f32.mrb[30].mxu0  ;;  %2327 = vmatpush3.bf16.msra.mxu0 %v2455_v18 }
 0xb3c   : > { %v2309_v40 = vpop.f32.mrb[31].mxu0  ;;  %v1507_v41 = vsel %vm580_vm3, %v1502_v36, -inf  ;;  %2328 = vmatprep.subr.bf16.mxu0 %v2564_v2 }
 0xb3d   : > { %1508 = vmax.xlane.f32.xlu1 %v1507_v41 }
 0xbca   : > { %v1509_v44 = vpop.xlane.xlu1 %1508 }
 0xbcb   : > { %v1510_v45 = vsub.f32 %v1502_v36, %v1509_v44 }
 0xbcd   : > { %v1511_v46 = vmul.f32 1.442695, %v1510_v45 }
 0xbcf   : > { %2487 = vpow2.f32 %v1511_v46 }
 0xbd9   : > { %v2488_v47 = vpop.eup %2487 }
 0xbda   : > { %v1513_v48 = vpack.c.bf16 %v2488_v47, %v2488_v47 }
 0xbdc   : > { %2315 = vmatmul.mubr.msk.bf16.vlgmr.msra.gmra.mrb[24].mxu1 %vm580_vm3, %v1513_v48 }
 0xbdd   : > { %2319 = vmatpush3.bf16.msra.mxu1 %v2795_v57  ;;  %2322 = vmatprep.mubr.msk.bf16.mxu1 %vm2565_vm0, %v2564_v2  ;;  %v2456_v57 = vld [vmem:[%s3126_s10 + $0x18] sm:$0xff]  }
 0xbde   : > { %2320 = vmatprep.subr.bf16.mxu1 %v2564_v2  ;;  %2329 = vmatpush3.bf16.msra.mxu0 %v2456_v57 }
 0xbdf   : > { %2334 = vmatprep.subr.bf16.mxu0 %v2564_v2 }
 0xbe1   : > { %2321 = vmatpush3.bf16.msra.mxu1 %v2809_v9 }
 0xbe2   : > { %1719 = vmatprep.subr.bf16.mxu1 %v2459_v8 }
 0xbe4   : > { %2323 = vmatmul.mubr.msk.bf16.vlgmr.msra.gmra.mrb[28].mxu1 %vm580_vm3, %v1513_v48 }
 0xbe5   : > { %1751 = vmatprep.mubr.bf16.mxu1 %v2563_v1  ;;  %1720 = vmatpush1.bf16.msra.mxu1 %v2457_v10 }
 0xcaf   : > { %v1559_v49 = vpop.f32.mrb[24].mxu1 }
 0xcb0   : > { %v2316_v9 = vpop.f32.mrb[25].mxu1 }
 0xcb1   : > { %v1562_v50 = vpop.f32.mrb[26].mxu1  ;;  %v2471_v9 = vld [vmem:[%s3129_s13] sm:$0xff]  }
 0xcb2   : > { %v2317_v51 = vpop.f32.mrb[27].mxu1  ;;  %v2472_v50 = vld [vmem:[%s3129_s13 + $0x8] sm:$0xff]  }
 0xcb7   : > { %v1599_v52 = vpop.f32.mrb[28].mxu1 }
 0xcb8   : > { %v1605_v1 = vmax.f32 %v1599_v52, 1e-20  ;;  %v2324_v53 = vpop.f32.mrb[29].mxu1 }
 0xcb9   : > { %v1602_v54 = vpop.f32.mrb[30].mxu1  ;;  %v1876_v53 = vld [vmem:[%s3124_s8] sm:$0x1] }
 0xcba   : > { %2489 = vrcp.f32 %v1605_v1  ;;  %v2325_v55 = vpop.f32.mrb[31].mxu1  ;;  %v1888_v54 = vpack.i.b16 %v1876_v53, %v1876_v53 }
 0xcc4   : > { %v2490_v59 = vpop.eup %2489 }
 0xcc5   : > { %v1607_v60 = vmul.f32 %v2490_v59, %v1559_v49 }
 0xcc7   : > { %v1608_v13 = vpack.c.bf16 %v1607_v60, %v1607_v60  ;;  %v1893_v60 = vrot.slane %v1888_v54, %v2754_v32 }
 0xcc9   : > { %2331 = vmatmul.mubr.msk.bf16.vlgmr.msra.gmra.mrb[32].mxu0 %vm580_vm3, %v1608_v13 }
 0xcca   : > { %2350 = vmatprep.mubr.msk.bf16.mxu0 %vm2565_vm0, %v2564_v2  ;;  %2335 = vmatpush3.bf16.msra.mxu0 %v2463_v24 }
 0xccb   : > { %2336 = vmatprep.subr.bf16.mxu0 %v2564_v2 }
 0xcce   : > { %2337 = vmatpush3.bf16.msra.mxu0 %v2464_v25 }
 0xccf   : > { %2338 = vmatprep.subr.bf16.mxu0 %v2564_v2 }
 0xcd2   : > { %2339 = vmatpush3.bf16.msra.mxu0 %v2465_v56 }
 0xcd3   : > { %2340 = vmatprep.subr.bf16.mxu0 %v2564_v2 }
 0xcd6   : > { %2341 = vmatpush3.bf16.msra.mxu0 %v2466_v58 }
 0xcd7   : > { %2342 = vmatprep.subr.bf16.mxu0 %v2564_v2 }
 0xcda   : > { %2343 = vmatpush3.bf16.msra.mxu0 %v2467_v26 }
 0xcdb   : > { %2344 = vmatprep.subr.bf16.mxu0 %v2564_v2 }
 0xcde   : > { %2345 = vmatpush3.bf16.msra.mxu0 %v2468_v27 }
 0xcdf   : > { %2346 = vmatprep.subr.bf16.mxu0 %v2564_v2 }
 0xce2   : > { %2347 = vmatpush3.bf16.msra.mxu0 %v2469_v28 }
 0xce3   : > { %2348 = vmatprep.subr.bf16.mxu0 %v2564_v2 }
 0xce6   : > { %2349 = vmatpush3.bf16.msra.mxu0 %v2470_v29 }
 0xd9c   : > { %v1663_v61 = vpop.f32.mrb[32].mxu0 }
 0xd9d   : > { %v1669_v62 = vpack.c.bf16 %v1663_v61, %v1663_v61  ;;  %v2332_v63 = vpop.f32.mrb[33].mxu0 }
 0xd9e   : > { %v1666_v0 = vpop.f32.mrb[34].mxu0 }
 0xd9f   : > { %v3000_v3 = vadd.bf16 %v1669_v62, %v2910_v37  ;;  %v2333_v4 = vpop.f32.mrb[35].mxu0  ;;  %v2462_v37 = vld [vmem:[%s3127_s11 + $0x34] ss:$8 sps:$4 sm:$0xff]  }
 0xda0   : > { %1721 = vmatprep.subr.bf16.mxu1 %v2462_v37 }
 0xda1   : > { %v1673_v5 = vunpack.c.l.bf16 %v3000_v3  ;;  %1722 = vmatpush1.bf16.msra.mxu1 %v2460_v11 }
 0xda2   : > { %2354 = vmatprep.subr.bf16.mxu1 %v2564_v2 }
 0xda3   : > { %v1674_v6 = vmul.f32 %v1673_v5, %v1673_v5 }
 0xda5   : > { %v1675_v7 = vsel %vm580_vm3, %v1674_v6, 0.0 }
 0xda6   : > { %1676 = vadd.xlane.f32.xlu1 %v1675_v7 }
 0xe33   : > { %v1677_v12 = vpop.xlane.xlu1 %1676 }
 0xe34   : > { %v1678_v14 = vmul.f32 0.03125, %v1677_v12 }
 0xe36   : > { %v1679_v15 = vadd.f32 1e-05, %v1678_v14 }
 0xe38   : > { %2491 = vrsqrt.f32 %v1679_v15 }
 0xe42   : > { %v2492_v19 = vpop.eup %2491 }
 0xe43   : > { %v1681_v20 = vmul.f32 %v2492_v19, %v1673_v5 }
 0xe45   : > { %v1682_v22 = vpack.c.bf16 %v1681_v20, %v1681_v20 }
 0xe47   : > { %v1690_v23 = vmul.bf16 %v1689_v21, %v1682_v22 }
 0xe49   : > { %2133 = vmatmul.mubr.msk.bf16.vlgmr.msra.gmra.mrb[32].mxu1 %vm580_vm3, %v1690_v23 }
 0xe4a   : > { %2358 = vmatprep.mubr.msk.bf16.mxu1 %vm2565_vm0, %v2564_v2  ;;  %2355 = vmatpush3.bf16.msra.mxu1 %v2471_v9 }
 0xe4b   : > { %2356 = vmatprep.subr.bf16.mxu1 %v2564_v2 }
 0xe4e   : > { %2357 = vmatpush3.bf16.msra.mxu1 %v2472_v50 }
 0xf1c   : > { %v1753_v30 = vpop.f32.mrb[32].mxu1 }
 0xf1d   : > { %v2134_v31 = vmul.f32 -1.442695, %v1753_v30  ;;  %v1755_v43 = vpop.f32.mrb[33].mxu1 }
 0xf1e   : > { %v1757_v42 = vpop.f32.mrb[34].mxu1 }
 0xf1f   : > { %2493 = vpow2.f32 %v2134_v31  ;;  %v1758_v33 = vpop.f32.mrb[35].mxu1 }
 0xf29   : > { %v2494_v34 = vpop.eup %2493 }
 0xf2a   : > { %v1763_v35 = vadd.f32 1.0, %v2494_v34 }
 0xf2c   : > { %2495 = vrcp.f32 %v1763_v35 }
 0xf36   : > { %v2496_v36 = vpop.eup %2495 }
 0xf37   : > { %v1766_v38 = vmul.f32 %v2496_v36, %v1753_v30 }
 0xf39   : > { %v1767_v39 = vmul.f32 %v1766_v38, %v1755_v43 }
 0xf3b   : > { %v1768_v40 = vpack.c.bf16 %v1767_v39, %v1767_v39 }
 0xf3d   : > { %2351 = vmatmul.mubr.bf16.vlgmr.msra.gmra.mrb[36].mxu0 %v1768_v40 }
0x1010   : > { %v1868_v41 = vpop.f32.mrb[36].mxu0 }
0x1011   : > { %v1874_v44 = vpack.c.bf16 %v1868_v41, %v1868_v41  ;;  %v2352_v45 = vpop.f32.mrb[37].mxu0 }
0x1012   : > { %v1871_v46 = vpop.f32.mrb[38].mxu0 }
0x1013   : > { %v1875_v47 = vadd.bf16 %v1874_v44, %v3000_v3  ;;  %v2353_v48 = vpop.f32.mrb[39].mxu0 }
0x1015   : > { %v1877_v18 = vunpack.c.l.bf16 %v1875_v47 }
0x1017   : > { %v1878_v57 = vmul.f32 %v1877_v18, %v1877_v18 }
0x1019   : > { %v1879_v49 = vsel %vm580_vm3, %v1878_v57, 0.0 }
0x101a   : > { %1880 = vadd.xlane.f32.xlu1 %v1879_v49 }
0x10a7   : > { %v1881_v51 = vpop.xlane.xlu1 %1880 }
0x10a8   : > { %v1882_v52 = vmul.f32 0.03125, %v1881_v51 }
0x10aa   : > { %v1883_v1 = vadd.f32 1e-05, %v1882_v52 }
0x10ac   : > { %2497 = vrsqrt.f32 %v1883_v1 }
0x10b6   : > { %v2498_v55 = vpop.eup %2497 }
0x10b7   : > { %v1885_v59 = vmul.f32 %v2498_v55, %v1877_v18 }
0x10b9   : > { %v1886_v2 = vpack.c.bf16 %v1885_v59, %v1885_v59 }
0x10bb   : > { %v1894_v13 = vmul.bf16 %v1893_v60, %v1886_v2 }
0x10bd   : > { %2359 = vmatmul.mubr.msk.bf16.vlgmr.msra.gmra.mrb[36].mxu1 %vm580_vm3, %v1894_v13 }
0x1190   : > { %v1948_v32 = vpop.f32.mrb[36].mxu1 }
0x1191   : > { %1954 = vst [vmem:[%s471_s27] sm:$0xff] %v1948_v32  ;;  %v2360_v61 = vpop.f32.mrb[37].mxu1 }
0x1192   : > { %v1951_v62 = vpop.f32.mrb[38].mxu1 }
0x1193   : > { %2512 = shalt.err (!%p2509_p3)
}
0x1194   : > { %s2513_s15 = scalar_lea.hbm %s3076_s20, 128  ;;  %s2517_s26 = scalar_lea.hbm %s3130_s14, 256 }
0x1195   : > { %p2514_p4 = scmp.ne.s32.totalorder %s3076_s20, %s2513_s15  ;;  %p2518_p9 = scmp.lt.u32.totalorder %s3076_s20, %s3130_s14 }
0x1196   : > { %p2519_p10 = scmp.lt.u32.totalorder %s2517_s26, %s2513_s15  ;;  %p2521_p12 = scmp.lt.u32.totalorder %s2513_s15, %s3076_s20 }
0x1197   : > { %p2515_p7 = pnand %p2514_p4, %p2680_p5 }
0x1198   : > { %p2520_p11 = por %p2519_p10, %p2518_p9 }
0x1199   : > { %p2516_p8 = pneg %p2515_p7 }
0x119a   : > { %p2522_p13 = por %p2521_p12, %p2520_p11 }
0x119c   : > { %p2523_p0 = pnand %p2522_p13, %p2516_p8 }
0x119e   : > { %2526 = shalt.err (!%p2523_p0)
}
0x119f   : > { %2362 = dma.vmem_to_hbm [thread:$0]  (%p2680_p5), %s3071_s21, 128, %s3076_s20, %s1956_s28   ;;  %v2361_v63 = vpop.f32.mrb[39].mxu1 }
0x11a0 PF: > { %p2368_p1 = scmp.ge.s32.totalorder %s2561_s16, 2  ;;  %s1981_s1 = sand.u32 1, %s2549_s29  }
0x11a1   : > { %s1982_s18 = scalar_lea.sflag [#allocation3], %s1981_s1 }
0x11a2   : > { %p2365_p2 = pnand %p2368_p1, %p2684_p6 }
0x11a4   : > { %2544 = dma.done.wait (!%p2365_p2), %s1982_s18, 128  }
0x11a5   : > { %2546 = vsyncadd (!%p2365_p2), %s1982_s18, 4294967168  ;;  %s3142_s22 = sld [smem:[#allocation5_spill]]  ;;  %s3143_s15 = sld [smem:[#allocation6_spill]] }
0x11a6   : > { %p24_p3 = scmp.ge.s32.totalorder %s2667_s19, 4   ;;  %s3144_s29 = smov %s2553_s30 }
0x11a7   : > { %s3146_s16 = smov %s2667_s19 }
0x11a8   :  { %26 = sbr.rel (!%p24_p3) target bundleno = 6 (0x6), region = 120 }
0x11ab   : > { %s3145_s30 = smov %s3142_s22 }
0x11af   :  { %1987 = vsyncpa [#allocation3], 1 }
0x11b0   :  { %1989 = vsyncpa [#allocation3 + $0x1], 1 }

</bundles_post_ra>
